<compile_context>
chip_gen: v6e
topology: v6e:2x2x1
jax: 0.10.0
libtpu: 0.0.40
codegen_flags: <defaults>
</compile_context>

<pallas_src>
import jax
import jax.numpy as jnp
from jax.experimental import pallas as pl
from jax.experimental.pallas import tpu as pltpu


def _round_up(a, b):
    return (a + b - 1) // b * b


def _node_model_kernel(elo_ref, ecnt_ref,                 # scalar prefetch (SMEM)
                       dst_ref, feat_ref,                 # edge-tiled inputs
                       nfeat_ref,                         # node-tiled input (x ++ u[batch])
                       w1_ref, b1_ref,                    # MLP1 (fused) weights
                       w2n_ref, w2g_ref, b2_ref,          # MLP2 weights
                       out_ref, acc_ref):
    i = pl.program_id(0)                 # node tile (parallel)
    e = pl.program_id(1)                 # ragged edge-tile step (reduction)
    tn = acc_ref.shape[0]
    te = dst_ref.shape[1]

    @pl.when(e == 0)
    def _init():
        acc_ref[...] = jnp.zeros_like(acc_ref)

    # Only e_cnt[i] edge tiles actually intersect this node tile; later steps repeat the
    # same (already resident) block and are skipped here.
    @pl.when(e < ecnt_ref[i])
    def _accumulate():
        cd = feat_ref.dtype
        # ---- MLP1 on this edge tile: ReLU(feat @ W1 + b1) -> [TE, Hp]  (single matmul) ----
        h1 = jnp.dot(feat_ref[...], w1_ref[...], preferred_element_type=jnp.float32)
        h1 = jnp.maximum(h1 + b1_ref[...], 0.0).astype(cd)

        # ---- scatter(reduce='sum') via a per-block one-hot MXU matmul ----
        dst_local = dst_ref[...] - i * tn                               # [1, TE]
        iota = jax.lax.broadcasted_iota(jnp.int32, (tn, te), 0)         # [TN, TE]
        onehot = (iota == dst_local).astype(cd)                         # exact in bf16
        acc_ref[...] += jnp.dot(onehot, h1, preferred_element_type=jnp.float32)

    @pl.when(e == pl.num_programs(1) - 1)
    def _finalize():
        cd = feat_ref.dtype
        # ---- MLP2: ReLU([x,u_b] @ W2n + grouped @ W2g + b2) -> [TN, Hp] ----
        h2 = jnp.dot(nfeat_ref[...], w2n_ref[...], preferred_element_type=jnp.float32)
        h2 = h2 + jnp.dot(acc_ref[...].astype(cd), w2g_ref[...],
                          preferred_element_type=jnp.float32)
        out_ref[...] = jnp.maximum(h2 + b2_ref[...], 0.0).astype(out_ref.dtype)


def node_model_forward(x, edge_index, edge_attr, u, batch, params,
                       *, tile_n=128, tile_e=512, compute_dtype=jnp.float32):
    """Pallas implementation of NodeModel.forward (activation=True, reduce='sum').

    Tiling: tile_n=128 (v5e) / 256 (v6e, v7x) to fill the MXU; tile_e 512-1024.  VMEM stays
    a few MiB even at the largest combination, so the 32 MiB scoped limit is safe on all
    generations including v7x's 64 MiB VMEM.

    NOTE: the grid's second extent is data-dependent (max edge tiles per node tile), so this
    wrapper must be called eagerly (not inside jax.jit around the whole function).
    """
    w1, b1, w2, b2 = params["w1"], params["b1"], params["w2"], params["b2"]
    N, Fx = x.shape
    E, Fe = edge_attr.shape
    Fu = u.shape[1]
    out_dim = w1.shape[1]
    Ftot = 2 * Fx + Fe + Fu            # MLP1 input width (fused)
    Fn = Fx + Fu                       # node-side MLP2 input width (x ++ u[batch])

    Hp = _round_up(out_dim, 128)       # lane-dense hidden / output width
    Np = _round_up(N, tile_n)
    Ep = _round_up(max(E, 1), tile_e)
    n_node_tiles = Np // tile_n

    src = edge_index[0].astype(jnp.int32)
    dst = edge_index[1].astype(jnp.int32)

    # Sort edges by destination so each node tile sees a contiguous edge range.
    order = jnp.argsort(dst)
    src_s, dst_s = src[order], dst[order]

    # Cast BEFORE the gathers (halves gather/HBM traffic in bf16 mode).
    x_c = x.astype(compute_dtype)
    ea_c = edge_attr.astype(compute_dtype)[order]
    u_batch_c = u.astype(compute_dtype)[batch]                 # [N, Fu]

    # Fused MLP1 edge-feature stream: [x[dst], x[src], edge_attr, u[batch][dst]].
    feat_e = jnp.concatenate([x_c[dst_s], x_c[src_s], ea_c, u_batch_c[dst_s]], axis=-1)

    # Pad edge axis; padded edges get sentinel dst = Np so their one-hot column is 0.
    pad_e = Ep - E
    dst_p = jnp.concatenate([dst_s, jnp.full((pad_e,), Np, jnp.int32)])
    feat_p = jnp.pad(feat_e, ((0, pad_e), (0, 0)))
    dst_2d = dst_p.reshape(1, Ep)

    # Ragged per-node-tile edge-tile ranges (scalar prefetch, SMEM).
    node_tile_starts = jnp.arange(n_node_tiles, dtype=jnp.int32) * tile_n
    starts = jnp.searchsorted(dst_s, node_tile_starts, side="left")
    ends = jnp.searchsorted(dst_s, node_tile_starts + tile_n, side="left")
    has_edges = ends > starts
    e_lo = jnp.where(has_edges, starts // tile_e, 0).astype(jnp.int32)
    e_hi = jnp.where(has_edges, (ends - 1) // tile_e, 0).astype(jnp.int32)
    e_cnt = jnp.where(has_edges, e_hi - e_lo + 1, 0).astype(jnp.int32)

    e_cnt_host = jax.device_get(e_cnt)
    max_edge_tiles = max(int(e_cnt_host.max()) if e_cnt_host.size else 0, 1)
    total_visits = int(e_cnt_host.sum())

    # Pad node axis; extra rows are sliced off the output.
    pad_n = Np - N
    nfeat_p = jnp.pad(jnp.concatenate([x_c, u_batch_c], axis=-1), ((0, pad_n), (0, 0)))

    # Weights: pad output columns to Hp (zeros), fused layouts, no in-kernel concat.
    def pad_cols(a):
        return jnp.pad(a, ((0, 0), (0, Hp - out_dim)))

    w1p = pad_cols(w1).astype(compute_dtype)                                   # [Ftot, Hp]
    b1p = pad_cols(b1.reshape(1, -1)).astype(jnp.float32)                      # [1, Hp]
    w2n = pad_cols(jnp.concatenate([w2[:Fx], w2[Fx + out_dim:]], axis=0)
                   ).astype(compute_dtype)                                     # [Fn, Hp]
    w2g = jnp.pad(w2[Fx:Fx + out_dim],
                  ((0, Hp - out_dim), (0, Hp - out_dim))).astype(compute_dtype)  # [Hp, Hp]
    b2p = pad_cols(b2.reshape(1, -1)).astype(jnp.float32)                      # [1, Hp]

    # Edge-tile index clamped into the per-node-tile range: out-of-range grid steps repeat
    # the previous block index so Pallas skips the re-DMA.
    def _edge_idx(i, e, elo_ref, ecnt_ref):
        return elo_ref[i] + jnp.minimum(e, jnp.maximum(ecnt_ref[i] - 1, 0))

    grid_spec = pltpu.PrefetchScalarGridSpec(
        num_scalar_prefetch=2,
        grid=(n_node_tiles, max_edge_tiles),
        in_specs=[
            pl.BlockSpec((1, tile_e), lambda i, e, elo, ecnt: (0, _edge_idx(i, e, elo, ecnt))),
            pl.BlockSpec((tile_e, Ftot), lambda i, e, elo, ecnt: (_edge_idx(i, e, elo, ecnt), 0)),
            pl.BlockSpec((tile_n, Fn), lambda i, e, *_: (i, 0)),
            pl.BlockSpec((Ftot, Hp), lambda i, e, *_: (0, 0)),
            pl.BlockSpec((1, Hp), lambda i, e, *_: (0, 0)),
            pl.BlockSpec((Fn, Hp), lambda i, e, *_: (0, 0)),
            pl.BlockSpec((Hp, Hp), lambda i, e, *_: (0, 0)),
            pl.BlockSpec((1, Hp), lambda i, e, *_: (0, 0)),
        ],
        out_specs=pl.BlockSpec((tile_n, Hp), lambda i, e, *_: (i, 0)),
        scratch_shapes=[pltpu.VMEM((tile_n, Hp), jnp.float32)],
    )
    # TODO(synk): if a profile shows exposed DMA on the edge stream, add
    # pipeline_mode=pl.Buffered(3) to the feat BlockSpec.

    itemsize = jnp.dtype(compute_dtype).itemsize
    flops = (2 * total_visits * tile_e * Ftot * Hp          # MLP1
             + 2 * total_visits * tile_n * tile_e * Hp      # one-hot scatter matmul
             + 2 * Np * (Fn + Hp) * Hp)                     # MLP2
    bytes_accessed = (total_visits * tile_e * (Ftot * itemsize + 4)
                      + Np * Fn * itemsize
                      + Np * Hp * itemsize
                      + (w1p.size + w2n.size + w2g.size) * itemsize
                      + (b1p.size + b2p.size) * 4)

    out_padded = pl.pallas_call(
        _node_model_kernel,
        out_shape=jax.ShapeDtypeStruct((Np, Hp), compute_dtype),
        grid_spec=grid_spec,
        compiler_params=pltpu.CompilerParams(
            dimension_semantics=("parallel", "arbitrary"),
            vmem_limit_bytes=32 * 1024 * 1024),
        cost_estimate=pl.CostEstimate(flops=flops, transcendentals=0,
                                      bytes_accessed=bytes_accessed),
    )(e_lo, e_cnt,
      dst_2d, feat_p, nfeat_p,
      w1p, b1p, w2n, w2g, b2p)

    return out_padded[:N, :out_dim]


def init_params(key, in_dim_mlp1, in_dim_mlp2, out_dim):
    """Deterministic init; weights stored as [in, out] so y = x @ W + b."""
    k1, k2, k3, k4 = jax.random.split(key, 4)
    s1 = 1.0 / jnp.sqrt(in_dim_mlp1)
    s2 = 1.0 / jnp.sqrt(in_dim_mlp2)
    return {
        "w1": jax.random.uniform(k1, (in_dim_mlp1, out_dim), jnp.float32, -s1, s1),
        "b1": jax.random.uniform(k2, (1, out_dim), jnp.float32, -s1, s1),
        "w2": jax.random.uniform(k3, (in_dim_mlp2, out_dim), jnp.float32, -s2, s2),
        "b2": jax.random.uniform(k4, (1, out_dim), jnp.float32, -s2, s2),
    }


def _reference_forward(x, edge_index, edge_attr, u, batch, params):
    # Pure-JAX reference mirroring the PyTorch forward (reduce='sum', ReLU on).
    src, dst = edge_index[0], edge_index[1]
    node_features = jnp.concatenate([x[dst], x[src]], axis=-1)
    u_batch = u[batch]
    all_features = jnp.concatenate([node_features, edge_attr, u_batch[dst]], axis=-1)
    h1 = jnp.maximum(all_features @ params["w1"] + params["b1"], 0.0)
    grouped = jax.ops.segment_sum(h1, dst, num_segments=x.shape[0])
    mlp2_in = jnp.concatenate([x, grouped, u_batch], axis=-1)
    return jnp.maximum(mlp2_in @ params["w2"] + params["b2"], 0.0)


if __name__ == "__main__":
    # Small synthetic graph: 2 graphs, 8 nodes, 16 edges.
    N, E, B = 8, 16, 2
    Fx, Fe, Fu, out_dim = 4, 3, 5, 32
    in_dim_mlp1 = 2 * Fx + Fe + Fu           # = 16
    in_dim_mlp2 = Fx + out_dim + Fu          # = 41

    key = jax.random.PRNGKey(0)
    kx, ke, ku, ks, kd, kp = jax.random.split(key, 6)
    x = jax.random.normal(kx, (N, Fx), jnp.float32)
    edge_attr = jax.random.normal(ke, (E, Fe), jnp.float32)
    u = jax.random.normal(ku, (B, Fu), jnp.float32)
    edge_index = jnp.stack([
        jax.random.randint(ks, (E,), 0, N, jnp.int32),
        jax.random.randint(kd, (E,), 0, N, jnp.int32),
    ], axis=0)                                                  # [2, E]
    batch = jnp.concatenate([jnp.zeros(N // 2, jnp.int32),
                             jnp.ones(N - N // 2, jnp.int32)])  # [N]

    params = init_params(kp, in_dim_mlp1, in_dim_mlp2, out_dim)
    ref = _reference_forward(x, edge_index, edge_attr, u, batch, params)

    # f32 path: tight numerical check.
    out_f32 = node_model_forward(x, edge_index, edge_attr, u, batch, params,
                                 tile_n=128, tile_e=512, compute_dtype=jnp.float32)
    out_f32 = jax.block_until_ready(out_f32)
    assert out_f32.shape == (N, out_dim)
    assert jnp.allclose(out_f32, ref, atol=1e-4, rtol=1e-4)

    # bf16 path (production setting): loose tolerance, f32 accumulation kept in-kernel.
    out_bf16 = node_model_forward(x, edge_index, edge_attr, u, batch, params,
                                  tile_n=128, tile_e=512, compute_dtype=jnp.bfloat16)
    out_bf16 = jax.block_until_ready(out_bf16)
    assert out_bf16.shape == (N, out_dim)
    assert jnp.allclose(out_bf16.astype(jnp.float32), ref, atol=5e-2, rtol=5e-2)

    # TODO(synk): only reduce='sum' and activation=True (the module defaults) are
    # implemented; 'mean'/'max' need per-node edge counts / a segment-max variant.
    print("KERNEL_OK")
</pallas_src>

<mosaic_0001>
module attributes {stable_mosaic.version = 11 : i64} {
  func.func @_node_model_kernel(%arg0: i32, %arg1: i32, %arg2: memref<1xi32, #tpu.memory_space<smem>>, %arg3: memref<1xi32, #tpu.memory_space<smem>>, %arg4: memref<1x512xi32, #tpu.memory_space<vmem>>, %arg5: memref<512x16xf32, #tpu.memory_space<vmem>>, %arg6: memref<128x9xf32, #tpu.memory_space<vmem>>, %arg7: memref<16x128xf32, #tpu.memory_space<vmem>>, %arg8: memref<1x128xf32, #tpu.memory_space<vmem>>, %arg9: memref<9x128xf32, #tpu.memory_space<vmem>>, %arg10: memref<128x128xf32, #tpu.memory_space<vmem>>, %arg11: memref<1x128xf32, #tpu.memory_space<vmem>>, %arg12: memref<128x128xf32, #tpu.memory_space<vmem>>, %arg13: memref<128x128xf32, #tpu.memory_space<vmem>>) attributes {dimension_semantics = [#tpu.dimension_semantics<parallel>, #tpu.dimension_semantics<arbitrary>], iteration_bounds = array<i64: 1, 1>, scalar_prefetch = 2 : i64, scratch_operands = 1 : i64, tpu.core_type = #tpu.core_type<tc>, window_params = [{transform_indices = @transform_0, window_bounds = array<i64: 1, 512>}, {transform_indices = @transform_1, window_bounds = array<i64: 512, 16>}, {transform_indices = @transform_2, window_bounds = array<i64: 128, 9>}, {pipeline_mode = #tpu.pipeline_mode<synchronous>, transform_indices = @transform_3, window_bounds = array<i64: 16, 128>}, {pipeline_mode = #tpu.pipeline_mode<synchronous>, transform_indices = @transform_4, window_bounds = array<i64: 1, 128>}, {pipeline_mode = #tpu.pipeline_mode<synchronous>, transform_indices = @transform_5, window_bounds = array<i64: 9, 128>}, {pipeline_mode = #tpu.pipeline_mode<synchronous>, transform_indices = @transform_6, window_bounds = array<i64: 128, 128>}, {pipeline_mode = #tpu.pipeline_mode<synchronous>, transform_indices = @transform_7, window_bounds = array<i64: 1, 128>}, {transform_indices = @transform_8, window_bounds = array<i64: 128, 128>}]} {
    %c0_i32 = arith.constant 0 : i32
    %0 = arith.cmpi eq, %arg1, %c0_i32 : i32
    %1 = arith.extui %0 : i1 to i32
    %c0_i32_0 = arith.constant 0 : i32
    %2 = arith.cmpi ne, %1, %c0_i32_0 : i32
    scf.if %2 {
      %cst = arith.constant 0.000000e+00 : f32
      %11 = vector.broadcast %cst : f32 to vector<128x128xf32>
      %c0 = arith.constant 0 : index
      %c0_4 = arith.constant 0 : index
      %12 = vector.load %arg13[%c0, %c0_4] : memref<128x128xf32, #tpu.memory_space<vmem>>, vector<128x128xf32>
      tpu.vector_store %arg13[%c0, %c0_4], %11 {strides = array<i32>} : memref<128x128xf32, #tpu.memory_space<vmem>>, vector<128x128xf32>,
    } else {
    }
    %3 = arith.index_cast %arg0 : i32 to index
    %4 = memref.load %arg3[%3] : memref<1xi32, #tpu.memory_space<smem>>
    %5 = arith.cmpi slt, %arg1, %4 : i32
    %6 = arith.extui %5 : i1 to i32
    %c0_i32_1 = arith.constant 0 : i32
    %7 = arith.cmpi ne, %6, %c0_i32_1 : i32
    scf.if %7 {
      %c0 = arith.constant 0 : index
      %c0_4 = arith.constant 0 : index
      %11 = vector.load %arg5[%c0, %c0_4] : memref<512x16xf32, #tpu.memory_space<vmem>>, vector<512x16xf32>
      %c0_5 = arith.constant 0 : index
      %c0_6 = arith.constant 0 : index
      %12 = vector.load %arg7[%c0_5, %c0_6] : memref<16x128xf32, #tpu.memory_space<vmem>>, vector<16x128xf32>
      %cst = arith.constant dense<0.000000e+00> : vector<512x128xf32>
      %13 = tpu.matmul %11, %12, %cst {dimension_numbers = #tpu.dot_dimension_numbers<[1], [0], [0], [1], [0, 0, 1, 1], [], []>} : vector<512x16xf32>, vector<16x128xf32>, vector<512x128xf32> -> vector<512x128xf32>
      %c0_7 = arith.constant 0 : index
      %c0_8 = arith.constant 0 : index
      %14 = vector.load %arg8[%c0_7, %c0_8] : memref<1x128xf32, #tpu.memory_space<vmem>>, vector<1x128xf32>
      %15 = vector.broadcast %14 : vector<1x128xf32> to vector<512x128xf32>
      %16 = arith.addf %13, %15 : vector<512x128xf32>
      %cst_9 = arith.constant 0.000000e+00 : f32
      %17 = vector.broadcast %cst_9 : f32 to vector<512x128xf32>
      %18 = arith.maximumf %16, %17 : vector<512x128xf32>
      %c0_10 = arith.constant 0 : index
      %c0_11 = arith.constant 0 : index
      %19 = vector.load %arg4[%c0_10, %c0_11] : memref<1x512xi32, #tpu.memory_space<vmem>>, vector<1x512xi32>
      %c128_i32 = arith.constant 128 : i32
      %20 = arith.muli %arg0, %c128_i32 : i32
      %21 = vector.broadcast %20 : i32 to vector<1x512xi32>
      %22 = arith.subi %19, %21 : vector<1x512xi32>
      %23 = tpu.iota {dimensions = array<i32: 0>} : vector<128x512xi32>
      %24 = vector.broadcast %22 : vector<1x512xi32> to vector<128x512xi32>
      %25 = arith.cmpi eq, %23, %24 : vector<128x512xi32>
      %26 = arith.extui %25 : vector<128x512xi1> to vector<128x512xi32>
      %27 = arith.sitofp %26 : vector<128x512xi32> to vector<128x512xf32>
      %c0_12 = arith.constant 0 : index
      %c0_13 = arith.constant 0 : index
      %28 = vector.load %arg13[%c0_12, %c0_13] : memref<128x128xf32, #tpu.memory_space<vmem>>, vector<128x128xf32>
      %cst_14 = arith.constant dense<0.000000e+00> : vector<128x128xf32>
      %29 = tpu.matmul %27, %18, %cst_14 {dimension_numbers = #tpu.dot_dimension_numbers<[1], [0], [0], [1], [0, 0, 1, 1], [], []>} : vector<128x512xf32>, vector<512x128xf32>, vector<128x128xf32> -> vector<128x128xf32>
      %30 = arith.addf %28, %29 : vector<128x128xf32>
      %c0_15 = arith.constant 0 : index
      %c0_16 = arith.constant 0 : index
      %31 = vector.load %arg13[%c0_15, %c0_16] : memref<128x128xf32, #tpu.memory_space<vmem>>, vector<128x128xf32>
      tpu.vector_store %arg13[%c0_15, %c0_16], %30 {strides = array<i32>} : memref<128x128xf32, #tpu.memory_space<vmem>>, vector<128x128xf32>,
    } else {
    }
    %c0_i32_2 = arith.constant 0 : i32
    %8 = arith.cmpi eq, %arg1, %c0_i32_2 : i32
    %9 = arith.extui %8 : i1 to i32
    %c0_i32_3 = arith.constant 0 : i32
    %10 = arith.cmpi ne, %9, %c0_i32_3 : i32
    scf.if %10 {
      %c0 = arith.constant 0 : index
      %c0_4 = arith.constant 0 : index
      %11 = vector.load %arg6[%c0, %c0_4] : memref<128x9xf32, #tpu.memory_space<vmem>>, vector<128x9xf32>
      %c0_5 = arith.constant 0 : index
      %c0_6 = arith.constant 0 : index
      %12 = vector.load %arg9[%c0_5, %c0_6] : memref<9x128xf32, #tpu.memory_space<vmem>>, vector<9x128xf32>
      %cst = arith.constant dense<0.000000e+00> : vector<128x128xf32>
      %13 = tpu.matmul %11, %12, %cst {dimension_numbers = #tpu.dot_dimension_numbers<[1], [0], [0], [1], [0, 0, 1, 1], [], []>} : vector<128x9xf32>, vector<9x128xf32>, vector<128x128xf32> -> vector<128x128xf32>
      %c0_7 = arith.constant 0 : index
      %c0_8 = arith.constant 0 : index
      %14 = vector.load %arg13[%c0_7, %c0_8] : memref<128x128xf32, #tpu.memory_space<vmem>>, vector<128x128xf32>
      %c0_9 = arith.constant 0 : index
      %c0_10 = arith.constant 0 : index
      %15 = vector.load %arg10[%c0_9, %c0_10] : memref<128x128xf32, #tpu.memory_space<vmem>>, vector<128x128xf32>
      %cst_11 = arith.constant dense<0.000000e+00> : vector<128x128xf32>
      %16 = tpu.matmul %14, %15, %cst_11 {dimension_numbers = #tpu.dot_dimension_numbers<[1], [0], [0], [1], [0, 0, 1, 1], [], []>} : vector<128x128xf32>, vector<128x128xf32>, vector<128x128xf32> -> vector<128x128xf32>
      %17 = arith.addf %13, %16 : vector<128x128xf32>
      %c0_12 = arith.constant 0 : index
      %c0_13 = arith.constant 0 : index
      %18 = vector.load %arg11[%c0_12, %c0_13] : memref<1x128xf32, #tpu.memory_space<vmem>>, vector<1x128xf32>
      %19 = vector.broadcast %18 : vector<1x128xf32> to vector<128x128xf32>
      %20 = arith.addf %17, %19 : vector<128x128xf32>
      %cst_14 = arith.constant 0.000000e+00 : f32
      %21 = vector.broadcast %cst_14 : f32 to vector<128x128xf32>
      %22 = arith.maximumf %20, %21 : vector<128x128xf32>
      %c0_15 = arith.constant 0 : index
      %c0_16 = arith.constant 0 : index
      %23 = vector.load %arg12[%c0_15, %c0_16] : memref<128x128xf32, #tpu.memory_space<vmem>>, vector<128x128xf32>
      tpu.vector_store %arg12[%c0_15, %c0_16], %22 {strides = array<i32>} : memref<128x128xf32, #tpu.memory_space<vmem>>, vector<128x128xf32>,
    } else {
    }
    return
  }
  func.func @transform_0(%arg0: i32, %arg1: i32, %arg2: memref<1xi32, #tpu.memory_space<smem>>, %arg3: memref<1xi32, #tpu.memory_space<smem>>) -> (i32, i32) {
    %0 = arith.index_cast %arg0 : i32 to index
    %1 = memref.load %arg2[%0] : memref<1xi32, #tpu.memory_space<smem>>
    %2 = arith.index_cast %arg0 : i32 to index
    %3 = memref.load %arg3[%2] : memref<1xi32, #tpu.memory_space<smem>>
    %c1_i32 = arith.constant 1 : i32
    %4 = arith.subi %3, %c1_i32 : i32
    %c0_i32 = arith.constant 0 : i32
    %5 = arith.maxsi %4, %c0_i32 : i32
    %6 = arith.minsi %arg1, %5 : i32
    %7 = arith.addi %1, %6 : i32
    %c0_i32_0 = arith.constant 0 : i32
    %c0_i32_1 = arith.constant 0 : i32
    return %c0_i32_0, %7 : i32, i32
  }
  func.func @transform_1(%arg0: i32, %arg1: i32, %arg2: memref<1xi32, #tpu.memory_space<smem>>, %arg3: memref<1xi32, #tpu.memory_space<smem>>) -> (i32, i32) {
    %0 = arith.index_cast %arg0 : i32 to index
    %1 = memref.load %arg2[%0] : memref<1xi32, #tpu.memory_space<smem>>
    %2 = arith.index_cast %arg0 : i32 to index
    %3 = memref.load %arg3[%2] : memref<1xi32, #tpu.memory_space<smem>>
    %c1_i32 = arith.constant 1 : i32
    %4 = arith.subi %3, %c1_i32 : i32
    %c0_i32 = arith.constant 0 : i32
    %5 = arith.maxsi %4, %c0_i32 : i32
    %6 = arith.minsi %arg1, %5 : i32
    %7 = arith.addi %1, %6 : i32
    %c0_i32_0 = arith.constant 0 : i32
    %c0_i32_1 = arith.constant 0 : i32
    return %7, %c0_i32_0 : i32, i32
  }
  func.func @transform_2(%arg0: i32, %arg1: i32, %arg2: memref<1xi32, #tpu.memory_space<smem>>, %arg3: memref<1xi32, #tpu.memory_space<smem>>) -> (i32, i32) {
    %c0_i32 = arith.constant 0 : i32
    %c0_i32_0 = arith.constant 0 : i32
    return %arg0, %c0_i32 : i32, i32
  }
  func.func @transform_3(%arg0: i32, %arg1: i32, %arg2: memref<1xi32, #tpu.memory_space<smem>>, %arg3: memref<1xi32, #tpu.memory_space<smem>>) -> (i32, i32) {
    %c0_i32 = arith.constant 0 : i32
    %c0_i32_0 = arith.constant 0 : i32
    %c0_i32_1 = arith.constant 0 : i32
    return %c0_i32, %c0_i32_0 : i32, i32
  }
  func.func @transform_4(%arg0: i32, %arg1: i32, %arg2: memref<1xi32, #tpu.memory_space<smem>>, %arg3: memref<1xi32, #tpu.memory_space<smem>>) -> (i32, i32) {
    %c0_i32 = arith.constant 0 : i32
    %c0_i32_0 = arith.constant 0 : i32
    %c0_i32_1 = arith.constant 0 : i32
    return %c0_i32, %c0_i32_0 : i32, i32
  }
  func.func @transform_5(%arg0: i32, %arg1: i32, %arg2: memref<1xi32, #tpu.memory_space<smem>>, %arg3: memref<1xi32, #tpu.memory_space<smem>>) -> (i32, i32) {
    %c0_i32 = arith.constant 0 : i32
    %c0_i32_0 = arith.constant 0 : i32
    %c0_i32_1 = arith.constant 0 : i32
    return %c0_i32, %c0_i32_0 : i32, i32
  }
  func.func @transform_6(%arg0: i32, %arg1: i32, %arg2: memref<1xi32, #tpu.memory_space<smem>>, %arg3: memref<1xi32, #tpu.memory_space<smem>>) -> (i32, i32) {
    %c0_i32 = arith.constant 0 : i32
    %c0_i32_0 = arith.constant 0 : i32
    %c0_i32_1 = arith.constant 0 : i32
    return %c0_i32, %c0_i32_0 : i32, i32
  }
  func.func @transform_7(%arg0: i32, %arg1: i32, %arg2: memref<1xi32, #tpu.memory_space<smem>>, %arg3: memref<1xi32, #tpu.memory_space<smem>>) -> (i32, i32) {
    %c0_i32 = arith.constant 0 : i32
    %c0_i32_0 = arith.constant 0 : i32
    %c0_i32_1 = arith.constant 0 : i32
    return %c0_i32, %c0_i32_0 : i32, i32
  }
  func.func @transform_8(%arg0: i32, %arg1: i32, %arg2: memref<1xi32, #tpu.memory_space<smem>>, %arg3: memref<1xi32, #tpu.memory_space<smem>>) -> (i32, i32) {
    %c0_i32 = arith.constant 0 : i32
    %c0_i32_0 = arith.constant 0 : i32
    return %arg0, %c0_i32 : i32, i32
  }
}

</mosaic_0001>

<bundles_post_ra>
// kernel: tpu_custom_call.1
= control target key start
LH: loop header
LB: loop body
LE: loop exit
PB: predicated region body
PF: predicated region fallthrough
CT: control target
= control target key end

     0   :  { %17 = vsyncpa [#allocation7], 0  ;;  %v2673_v0 = vmov 0.0   ;;  %s3569_s0 = inlined_call_operand.<no memory space> [shape: s32[1], index: 0, kind: input, shape index: {}]   ;;  %s3570_s1 = inlined_call_operand.<no memory space> [shape: s32[1], index: 1, kind: input, shape index: {}]   ;;  %s3571_s2 = inlined_call_operand.vmem [shape: s32[1,512], index: 2, kind: input, shape index: {}]   ;;  %s3572_s3 = inlined_call_operand.vmem [shape: f32[512,16], index: 3, kind: input, shape index: {}]   ;;  %s3573_s4 = inlined_call_operand.vmem [shape: f32[128,9], index: 4, kind: input, shape index: {}]   ;;  %s3574_s5 = inlined_call_operand.vmem [shape: f32[16,128], index: 5, kind: input, shape index: {}]   ;;  %s3575_s6 = inlined_call_operand.vmem [shape: f32[1,128], index: 6, kind: input, shape index: {}]   ;;  %s3576_s7 = inlined_call_operand.vmem [shape: f32[9,128], index: 7, kind: input, shape index: {}]   ;;  %s3577_s8 = inlined_call_operand.vmem [shape: f32[128,128], index: 8, kind: input, shape index: {}]   ;;  %s3578_s9 = inlined_call_operand.vmem [shape: f32[1,128], index: 9, kind: input, shape index: {}]   ;;  %s3579_s10 = inlined_call_operand.hbm [shape: f32[128,128], index: 10, kind: output, shape index: {}]  }
   0x1   :  { %s1928_s15 = sadd.s32 4294967295, %s3570_s1  ;;  %149 = vst [vmem:[#allocation2 + $0x30] sm:$0xff] %v2673_v0  ;;  %150 = vst [vmem:[#allocation2] sm:$0xff] %v2673_v0  ;;  %p1936_p3 = scmp.le.s32.totalorder %s3570_s1, 0 }
   0x2   :  { %p2736_p0 = scmp.gt.s32.totalorder %s1928_s15, 0  ;;  %151 = vst [vmem:[#allocation2 + $0x58] sm:$0xff] %v2673_v0  ;;  %152 = vst [vmem:[#allocation2 + $0x18] sm:$0xff] %v2673_v0 }
   0x3   :  { %153 = vst [vmem:[#allocation2 + $0x50] sm:$0xff] %v2673_v0  ;;  %154 = vst [vmem:[#allocation2 + $0x68] sm:$0xff] %v2673_v0 }
   0x4   :  { %155 = vst [vmem:[#allocation2 + $0x8] sm:$0xff] %v2673_v0  ;;  %156 = vst [vmem:[#allocation2 + $0x48] sm:$0xff] %v2673_v0  ;;  %s3582_s15 = smov (!%p2736_p0, %s1928_s15), 0 }
   0x5   :  { %157 = vst [vmem:[#allocation2 + $0x40] sm:$0xff] %v2673_v0  ;;  %158 = vst [vmem:[#allocation2 + $0x20] sm:$0xff] %v2673_v0  ;;  %s3584_s15 = smov (%p2736_p0, %s3582_s15), 0 }
   0x6   :  { %159 = vst [vmem:[#allocation2 + $0x10] sm:$0xff] %v2673_v0  ;;  %160 = vst [vmem:[#allocation2 + $0x38] sm:$0xff] %v2673_v0  ;;  %s109_s19 = sadd.s32 %s3584_s15, %s3569_s0 }
   0x7   :  { %161 = vst [vmem:[#allocation2 + $0x60] sm:$0xff] %v2673_v0  ;;  %162 = vst [vmem:[#allocation2 + $0x70] sm:$0xff] %v2673_v0  ;;  %s1930_s20 = sshll.u32 %s109_s19, 2  ;;  %s1933_s21 = sshll.u32 %s109_s19, 6 }
   0x8   :  { %163 = vst [vmem:[#allocation2 + $0x78] sm:$0xff] %v2673_v0  ;;  %164 = vst [vmem:[#allocation2 + $0x28] sm:$0xff] %v2673_v0  ;;  %p111_p1 = scmp.lt.s32.totalorder %s1930_s20, 3  ;;  %p132_p2 = scmp.lt.s32.totalorder %s1933_s21, 63 }
   0x9   :  { %169 = sbr.rel (%p1936_p3) target bundleno = 634 (0x27a), region = 41 }
   0xa   :  { %s3586_s20 = smov (!%p111_p1, %s1930_s20), 3  ;;  %s3588_s21 = smov (!%p132_p2, %s1933_s21), 63 }
   0xb   :  { %s113_s24 = scalar_lea.vmem %s3571_s2, %s3586_s20  ;;  %s1934_s25 = sshll.u32 %s3588_s21, 3 }
   0xc   :  { %s2756_s28 = scalar_lea.vmem %s3572_s3, %s1934_s25 }
   0xe   :  { %v235_v1 = vld [vmem:[%s3574_s5 + $0x8] sm:$0xff]  ;;  %v234_v2 = vld [vmem:[%s3574_s5] sm:$0xff]  ;;  %vm243_vm0 = vcmask 130048   ;;  %v172_v5 = vld [vmem:[%s2756_s28 + $0x10] sm:$0xff] }
   0xf   :  { %v170_v3 = vld [vmem:[%s2756_s28] sm:$0xff]  ;;  %2430 = vmatprep.subr.mxu0 %v235_v1  ;;  %v171_v4 = vld [vmem:[%s2756_s28 + $0x8] sm:$0xff]  ;;  %v173_v6 = vld [vmem:[%s2756_s28 + $0x18] sm:$0xff] }
  0x10   :  { %2434 = vmatprep.mubr.msk.f32.mxu0 %vm243_vm0, %v170_v3  ;;  %2431 = vmatpush3.msra.mxu0 %v235_v1  ;;  %v174_v7 = vld [vmem:[%s2756_s28 + $0x20] sm:$0xff]  ;;  %v175_v8 = vld [vmem:[%s2756_s28 + $0x28] sm:$0xff]  ;;  %v176_v9 = vld [vmem:[%s2756_s28 + $0x30] sm:$0xff]  ;;  %v889_v3 = vlaneseq }
  0x11   :  { %2432 = vmatprep.subr.mxu0 %v234_v2  ;;  %v177_v10 = vld [vmem:[%s2756_s28 + $0x38] sm:$0xff]  ;;  %v178_v11 = vld [vmem:[%s2756_s28 + $0x40] sm:$0xff]  ;;  %v179_v12 = vld [vmem:[%s2756_s28 + $0x48] sm:$0xff] }
  0x12   :  { %2433 = vmatpush3.msra.mxu0 %v234_v2  ;;  %v180_v13 = vld [vmem:[%s2756_s28 + $0x50] sm:$0xff]  ;;  %v181_v14 = vld [vmem:[%s2756_s28 + $0x58] sm:$0xff]  ;;  %v182_v15 = vld [vmem:[%s2756_s28 + $0x60] sm:$0xff] }
  0x13   :  { %2435 = vmatmul.mubr.msk.f32.vlgmr.msra.gmra.mxu0 %vm243_vm0, %v171_v4  ;;  %v183_v16 = vld [vmem:[%s2756_s28 + $0x68] sm:$0xff]  ;;  %v184_v17 = vld [vmem:[%s2756_s28 + $0x70] sm:$0xff]  ;;  %v185_v18 = vld [vmem:[%s2756_s28 + $0x78] sm:$0xff]  ;;  %v2895_v4 = vshrl.u32 %v889_v3, 7 }
  0x14   :  { %2437 = vmatprep.mubr.msk.f32.mxu0 %vm243_vm0, %v172_v5  ;;  %v186_v19 = vld [vmem:[%s2756_s28 + $0x80] sm:$0xff]  ;;  %v187_v20 = vld [vmem:[%s2756_s28 + $0x88] sm:$0xff]  ;;  %v188_v21 = vld [vmem:[%s2756_s28 + $0x90] sm:$0xff] }
  0x15   :  { %v189_v22 = vld [vmem:[%s2756_s28 + $0x98] sm:$0xff]  ;;  %v190_v23 = vld [vmem:[%s2756_s28 + $0xa0] sm:$0xff]  ;;  %v191_v24 = vld [vmem:[%s2756_s28 + $0xa8] sm:$0xff]  ;;  %v912_v5 = vsub.s32 1, %v2895_v4 }
  0x16   :  { %v192_v25 = vld [vmem:[%s2756_s28 + $0xb0] sm:$0xff]  ;;  %v193_v26 = vld [vmem:[%s2756_s28 + $0xb8] sm:$0xff]  ;;  %v194_v27 = vld [vmem:[%s2756_s28 + $0xc0] sm:$0xff] }
  0x17   :  { %2438 = vmatmul.mubr.msk.f32.gmra.mxu0 %vm243_vm0, %v173_v6  ;;  %v195_v28 = vld [vmem:[%s2756_s28 + $0xc8] sm:$0xff]  ;;  %v196_v29 = vld [vmem:[%s2756_s28 + $0xd0] sm:$0xff]  ;;  %v197_v30 = vld [vmem:[%s2756_s28 + $0xd8] sm:$0xff] }
  0x18   :  { %2440 = vmatprep.mubr.msk.f32.mxu0 %vm243_vm0, %v174_v7  ;;  %v198_v31 = vld [vmem:[%s2756_s28 + $0xe0] sm:$0xff]  ;;  %v199_v32 = vld [vmem:[%s2756_s28 + $0xe8] sm:$0xff]  ;;  %v200_v33 = vld [vmem:[%s2756_s28 + $0xf0] sm:$0xff]  ;;  %v908_v7 = vsub.s32 0, %v2895_v4 }
  0x19   :  { %v201_v34 = vld [vmem:[%s2756_s28 + $0xf8] sm:$0xff]  ;;  %v202_v35 = vld [vmem:[%s2756_s28 + $0x100] sm:$0xff]  ;;  %v203_v36 = vld [vmem:[%s2756_s28 + $0x108] sm:$0xff] }
  0x1a   :  { %v204_v37 = vld [vmem:[%s2756_s28 + $0x110] sm:$0xff]  ;;  %v205_v38 = vld [vmem:[%s2756_s28 + $0x118] sm:$0xff]  ;;  %v206_v39 = vld [vmem:[%s2756_s28 + $0x120] sm:$0xff] }
  0x1b   :  { %2441 = vmatmul.mubr.msk.f32.gmra.mxu0 %vm243_vm0, %v175_v8  ;;  %v207_v40 = vld [vmem:[%s2756_s28 + $0x128] sm:$0xff]  ;;  %v208_v41 = vld [vmem:[%s2756_s28 + $0x130] sm:$0xff]  ;;  %v209_v42 = vld [vmem:[%s2756_s28 + $0x138] sm:$0xff]  ;;  %v2905_v8 = vadd.s32 24, %v2895_v4 }
  0x1c   :  { %2443 = vmatprep.mubr.msk.f32.mxu0 %vm243_vm0, %v176_v9  ;;  %v210_v43 = vld [vmem:[%s2756_s28 + $0x140] sm:$0xff]  ;;  %v211_v44 = vld [vmem:[%s2756_s28 + $0x148] sm:$0xff]  ;;  %v212_v45 = vld [vmem:[%s2756_s28 + $0x150] sm:$0xff] }
  0x1d   :  { %v213_v46 = vld [vmem:[%s2756_s28 + $0x158] sm:$0xff]  ;;  %v214_v47 = vld [vmem:[%s2756_s28 + $0x160] sm:$0xff]  ;;  %v215_v48 = vld [vmem:[%s2756_s28 + $0x168] sm:$0xff] }
  0x1e   :  { %v216_v49 = vld [vmem:[%s2756_s28 + $0x170] sm:$0xff]  ;;  %v217_v50 = vld [vmem:[%s2756_s28 + $0x178] sm:$0xff]  ;;  %v218_v51 = vld [vmem:[%s2756_s28 + $0x180] sm:$0xff] }
  0x1f   :  { %2444 = vmatmul.mubr.msk.f32.gmra.mxu0 %vm243_vm0, %v177_v10  ;;  %v219_v52 = vld [vmem:[%s2756_s28 + $0x188] sm:$0xff]  ;;  %v220_v53 = vld [vmem:[%s2756_s28 + $0x190] sm:$0xff]  ;;  %v221_v54 = vld [vmem:[%s2756_s28 + $0x198] sm:$0xff] }
  0x20   :  { %2446 = vmatprep.mubr.msk.f32.mxu0 %vm243_vm0, %v178_v11  ;;  %v222_v55 = vld [vmem:[%s2756_s28 + $0x1a0] sm:$0xff]  ;;  %v223_v56 = vld [vmem:[%s2756_s28 + $0x1a8] sm:$0xff]  ;;  %v224_v57 = vld [vmem:[%s2756_s28 + $0x1b0] sm:$0xff]  ;;  %v2674_v11 = vmov 1.0  }
  0x21   :  { %v225_v58 = vld [vmem:[%s2756_s28 + $0x1b8] sm:$0xff]  ;;  %v226_v59 = vld [vmem:[%s2756_s28 + $0x1c0] sm:$0xff]  ;;  %v227_v60 = vld [vmem:[%s2756_s28 + $0x1c8] sm:$0xff] }
  0x22   :  { %v228_v61 = vld [vmem:[%s2756_s28 + $0x1d0] sm:$0xff]  ;;  %v229_v62 = vld [vmem:[%s2756_s28 + $0x1d8] sm:$0xff]  ;;  %v230_v63 = vld [vmem:[%s2756_s28 + $0x1e0] sm:$0xff] }
  0x23   :  { %2447 = vmatmul.mubr.msk.f32.gmra.mxu0 %vm243_vm0, %v179_v12  ;;  %v231_v0 = vld [vmem:[%s2756_s28 + $0x1e8] sm:$0xff]  ;;  %v232_v1 = vld [vmem:[%s2756_s28 + $0x1f0] sm:$0xff]  ;;  %v233_v2 = vld [vmem:[%s2756_s28 + $0x1f8] sm:$0xff] }
  0x24   :  { %2449 = vmatprep.mubr.msk.f32.mxu0 %vm243_vm0, %v180_v13  ;;  %v885_v6 = vld [vmem:[%s113_s24] sm:$0xf] }
  0x25   :  { %v2907_v9 = vrot.slane %v885_v6, %v912_v5  ;;  %v2909_v10 = vrot.slane %v885_v6, %v908_v7 }
  0x27   :  { %2450 = vmatmul.mubr.msk.f32.gmra.mxu0 %vm243_vm0, %v181_v14  ;;  %vm935_vm1 = vcmp.eq.s32.totalorder %v2905_v8, %v2907_v9  ;;  %vm923_vm3 = vcmp.eq.s32.totalorder %v2895_v4, %v2907_v9  ;;  %vm922_vm5 = vcmp.eq.s32.totalorder %v2895_v4, %v2909_v10  ;;  %vm934_vm14 = vcmp.eq.s32.totalorder %v2905_v8, %v2909_v10 }
  0x28   :  { %2452 = vmatprep.mubr.msk.f32.mxu0 %vm243_vm0, %v182_v15  ;;  %2072 = vmatprep.mubr.msk.f32.mxu1 %vm935_vm1, %v2674_v11 }
  0x2b   :  { %2453 = vmatmul.mubr.msk.f32.gmra.mxu0 %vm243_vm0, %v183_v16 }
  0x2c   :  { %2455 = vmatprep.mubr.msk.f32.mxu0 %vm243_vm0, %v184_v17 }
  0x2f   :  { %2456 = vmatmul.mubr.msk.f32.gmra.mxu0 %vm243_vm0, %v185_v18 }
  0x30   :  { %2458 = vmatprep.mubr.msk.f32.mxu0 %vm243_vm0, %v186_v19 }
  0x33   :  { %2459 = vmatmul.mubr.msk.f32.gmra.mxu0 %vm243_vm0, %v187_v20 }
  0x34   :  { %2461 = vmatprep.mubr.msk.f32.mxu0 %vm243_vm0, %v188_v21 }
  0x37   :  { %2462 = vmatmul.mubr.msk.f32.gmra.mxu0 %vm243_vm0, %v189_v22 }
  0x38   :  { %2464 = vmatprep.mubr.msk.f32.mxu0 %vm243_vm0, %v190_v23 }
  0x3b   :  { %2465 = vmatmul.mubr.msk.f32.gmra.mxu0 %vm243_vm0, %v191_v24 }
  0x3c   :  { %2467 = vmatprep.mubr.msk.f32.mxu0 %vm243_vm0, %v192_v25 }
  0x3f   :  { %2468 = vmatmul.mubr.msk.f32.gmra.mxu0 %vm243_vm0, %v193_v26  ;;  %v920_v26 = vsub.s32 3, %v2895_v4 }
  0x40   :  { %2470 = vmatprep.mubr.msk.f32.mxu0 %vm243_vm0, %v194_v27 }
  0x43   :  { %2471 = vmatmul.mubr.msk.f32.gmra.mxu0 %vm243_vm0, %v195_v28  ;;  %v916_v28 = vsub.s32 2, %v2895_v4 }
  0x44   :  { %2473 = vmatprep.mubr.msk.f32.mxu0 %vm243_vm0, %v196_v29  ;;  %v2940_v29 = vrot.slane %v885_v6, %v920_v26 }
  0x46   :  { %vm925_vm2 = vcmp.eq.s32.totalorder %v2895_v4, %v2940_v29 }
  0x47   :  { %2474 = vmatmul.mubr.msk.f32.gmra.mxu0 %vm243_vm0, %v197_v30 }
  0x48   :  { %2476 = vmatprep.mubr.msk.f32.mxu0 %vm243_vm0, %v198_v31  ;;  %v2942_v31 = vrot.slane %v885_v6, %v916_v28 }
  0x4a   :  { %vm924_vm4 = vcmp.eq.s32.totalorder %v2895_v4, %v2942_v31 }
  0x4b   :  { %2477 = vmatmul.mubr.msk.f32.gmra.mxu0 %vm243_vm0, %v199_v32 }
  0x4c   :  { %2479 = vmatprep.mubr.msk.f32.mxu0 %vm243_vm0, %v200_v33  ;;  %v2956_v33 = vadd.s32 8, %v2895_v4 }
  0x4e   :  { %vm929_vm6 = vcmp.eq.s32.totalorder %v2956_v33, %v2940_v29  ;;  %vm928_vm7 = vcmp.eq.s32.totalorder %v2956_v33, %v2942_v31  ;;  %vm927_vm8 = vcmp.eq.s32.totalorder %v2956_v33, %v2907_v9  ;;  %vm926_vm9 = vcmp.eq.s32.totalorder %v2956_v33, %v2909_v10 }
  0x4f   :  { %2480 = vmatmul.mubr.msk.f32.gmra.mxu0 %vm243_vm0, %v201_v34 }
  0x50   :  { %2482 = vmatprep.mubr.msk.f32.mxu0 %vm243_vm0, %v202_v35 }
  0x53   :  { %2483 = vmatmul.mubr.msk.f32.gmra.mxu0 %vm243_vm0, %v203_v36  ;;  %v2971_v36 = vadd.s32 16, %v2895_v4 }
  0x54   :  { %2485 = vmatprep.mubr.msk.f32.mxu0 %vm243_vm0, %v204_v37 }
  0x55   :  { %vm933_vm10 = vcmp.eq.s32.totalorder %v2971_v36, %v2940_v29  ;;  %vm932_vm11 = vcmp.eq.s32.totalorder %v2971_v36, %v2942_v31  ;;  %vm931_vm12 = vcmp.eq.s32.totalorder %v2971_v36, %v2907_v9  ;;  %vm930_vm13 = vcmp.eq.s32.totalorder %v2971_v36, %v2909_v10 }
  0x57   :  { %2486 = vmatmul.mubr.msk.f32.gmra.mxu0 %vm243_vm0, %v205_v38 }
  0x58   :  { %2488 = vmatprep.mubr.msk.f32.mxu0 %vm243_vm0, %v206_v39 }
  0x5b   :  { %2489 = vmatmul.mubr.msk.f32.gmra.mxu0 %vm243_vm0, %v207_v40 }
  0x5c   :  { %2491 = vmatprep.mubr.msk.f32.mxu0 %vm243_vm0, %v208_v41 }
  0x5f   :  { %2492 = vmatmul.mubr.msk.f32.gmra.mxu0 %vm243_vm0, %v209_v42 }
  0x60   :  { %2494 = vmatprep.mubr.msk.f32.mxu0 %vm243_vm0, %v210_v43 }
  0x63   :  { %2495 = vmatmul.mubr.msk.f32.gmra.mxu0 %vm243_vm0, %v211_v44 }
  0x64   :  { %2497 = vmatprep.mubr.msk.f32.mxu0 %vm243_vm0, %v212_v45 }
  0x67   :  { %2498 = vmatmul.mubr.msk.f32.gmra.mxu0 %vm243_vm0, %v213_v46 }
  0x68   :  { %2500 = vmatprep.mubr.msk.f32.mxu0 %vm243_vm0, %v214_v47 }
  0x6b   :  { %2501 = vmatmul.mubr.msk.f32.gmra.mxu0 %vm243_vm0, %v215_v48  ;;  %v2994_v48 = vld [vmem:[%s3575_s6] ss:$0 sm:$0xff] }
  0x6c   :  { %2503 = vmatprep.mubr.msk.f32.mxu0 %vm243_vm0, %v216_v49 }
  0x6f   :  { %2504 = vmatmul.mubr.msk.f32.gmra.mxu0 %vm243_vm0, %v217_v50 }
  0x70   :  { %2506 = vmatprep.mubr.msk.f32.mxu0 %vm243_vm0, %v218_v51 }
  0x73   :  { %2507 = vmatmul.mubr.msk.f32.gmra.mxu0 %vm243_vm0, %v219_v52 }
  0x74   :  { %2509 = vmatprep.mubr.msk.f32.mxu0 %vm243_vm0, %v220_v53 }
  0x77   :  { %2510 = vmatmul.mubr.msk.f32.gmra.mxu0 %vm243_vm0, %v221_v54 }
  0x78   :  { %2512 = vmatprep.mubr.msk.f32.mxu0 %vm243_vm0, %v222_v55 }
  0x7b   :  { %2513 = vmatmul.mubr.msk.f32.gmra.mxu0 %vm243_vm0, %v223_v56 }
  0x7c   :  { %2515 = vmatprep.mubr.msk.f32.mxu0 %vm243_vm0, %v224_v57 }
  0x7f   :  { %2516 = vmatmul.mubr.msk.f32.gmra.mxu0 %vm243_vm0, %v225_v58 }
  0x80   :  { %2518 = vmatprep.mubr.msk.f32.mxu0 %vm243_vm0, %v226_v59 }
  0x83   :  { %2519 = vmatmul.mubr.msk.f32.gmra.mxu0 %vm243_vm0, %v227_v60 }
  0x84   :  { %2521 = vmatprep.mubr.msk.f32.mxu0 %vm243_vm0, %v228_v61 }
  0x87   :  { %2522 = vmatmul.mubr.msk.f32.gmra.mxu0 %vm243_vm0, %v229_v62 }
  0x88   :  { %2524 = vmatprep.mubr.msk.f32.mxu0 %vm243_vm0, %v230_v63 }
  0x8b   :  { %2525 = vmatmul.mubr.msk.f32.gmra.mxu0 %vm243_vm0, %v231_v0 }
  0x8c   :  { %2527 = vmatprep.mubr.msk.f32.mxu0 %vm243_vm0, %v232_v1 }
  0x8f   :  { %2528 = vmatmul.mubr.msk.f32.gmra.mxu0 %vm243_vm0, %v233_v2 }
  0x90   :  { %2066 = vmatprep.mubr.msk.f32.mxu0 %vm923_vm3, %v2674_v11 }
  0xd3   :  { %v2914_v12 = vpop.f32.mrf.mxu0 }
  0xd5   :  { %v2916_v13 = vpop.f32.mrf.mxu0 }
  0xd7   :  { %v2918_v14 = vpop.f32.mrf.mxu0 }
  0xd9   :  { %v2920_v15 = vpop.f32.mrf.mxu0 }
  0xdb   :  { %v2922_v16 = vpop.f32.mrf.mxu0 }
  0xdd   :  { %v2924_v17 = vpop.f32.mrf.mxu0 }
  0xdf   :  { %v2926_v18 = vpop.f32.mrf.mxu0 }
  0xe1   :  { %v2928_v19 = vpop.f32.mrf.mxu0 }
  0xe3   :  { %v2930_v20 = vpop.f32.mrf.mxu0 }
  0xe5   :  { %v2932_v21 = vpop.f32.mrf.mxu0 }
  0xe7   :  { %v2934_v22 = vpop.f32.mrf.mxu0 }
  0xe8   :  { %v558_v3 = vadd.f32 %v2934_v22, %v2994_v48 }
  0xe9   :  { %v2936_v23 = vpop.f32.mrf.mxu0 }
  0xeb   :  { %v2454_v24 = vpop.f32.mrf.mxu0 }
  0xec   :  { %v568_v57 = vadd.f32 %v2454_v24, %v2994_v48 }
  0xed   :  { %v562_v25 = vpop.f32.mrf.mxu0 }
  0xee   :  { %v563_v62 = vadd.f32 %v2994_v48, %v562_v25  ;;  %v834_v5 = vmax.f32 %v568_v57, 0.0  ;;  %v553_v25 = vadd.f32 %v2994_v48, %v2936_v23 }
  0xef   :  { %v2457_v27 = vpop.f32.mrf.mxu0 }
  0xf0   :  { %v578_v49 = vadd.f32 %v2457_v27, %v2994_v48  ;;  %v833_v26 = vmax.f32 %v563_v62, 0.0 }
  0xf1   :  { %v572_v30 = vpop.f32.mrf.mxu0 }
  0xf2   :  { %v573_v52 = vadd.f32 %v2994_v48, %v572_v30  ;;  %v836_v58 = vmax.f32 %v578_v49, 0.0  ;;  %v548_v30 = vadd.f32 %v2930_v20, %v2994_v48 }
  0xf3   :  { %v2948_v32 = vpop.f32.mrf.mxu0 }
  0xf4   :  { %v835_v63 = vmax.f32 %v573_v52, 0.0 }
  0xf5   :  { %v2958_v34 = vpop.f32.mrf.mxu0 }
  0xf7   :  { %v2964_v35 = vpop.f32.mrf.mxu0 }
  0xf9   :  { %v2973_v37 = vpop.f32.mrf.mxu0 }
  0xfb   :  { %v2979_v38 = vpop.f32.mrf.mxu0 }
  0xfd   :  { %v2985_v39 = vpop.f32.mrf.mxu0 }
  0xff   :  { %v2987_v40 = vpop.f32.mrf.mxu0 }
 0x100   :  { %v618_v20 = vadd.f32 %v2987_v40, %v2994_v48  ;;  %v533_v40 = vadd.f32 %v2994_v48, %v2928_v19  ;;  %v603_v19 = vadd.f32 %v2994_v48, %v2985_v39  ;;  %v518_v39 = vadd.f32 %v2918_v14, %v2994_v48 }
 0x101   :  { %v2989_v41 = vpop.f32.mrf.mxu0  ;;  %v588_v14 = vadd.f32 %v2948_v32, %v2994_v48  ;;  %v503_v32 = vadd.f32 %v2994_v48, %v2916_v13 }
 0x103   :  { %v2472_v42 = vpop.f32.mrf.mxu0  ;;  %v821_v13 = vmax.f32 %v503_v32, 0.0 }
 0x104   :  { %v628_v22 = vadd.f32 %v2472_v42, %v2994_v48  ;;  %v831_v42 = vmax.f32 %v553_v25, 0.0  ;;  %v824_v25 = vmax.f32 %v518_v39, 0.0 }
 0x105   :  { %v622_v43 = vpop.f32.mrf.mxu0 }
 0x106   :  { %v623_v23 = vadd.f32 %v2994_v48, %v622_v43  ;;  %v538_v43 = vadd.f32 %v2926_v18, %v2994_v48  ;;  %v608_v18 = vadd.f32 %v2979_v38, %v2994_v48  ;;  %v523_v38 = vadd.f32 %v2994_v48, %v2924_v17 }
 0x107   :  { %v2475_v44 = vpop.f32.mrf.mxu0  ;;  %v593_v17 = vadd.f32 %v2994_v48, %v2973_v37  ;;  %v508_v37 = vadd.f32 %v2914_v12, %v2994_v48  ;;  %v838_v12 = vmax.f32 %v588_v14, 0.0 }
 0x108   :  { %v638_v1 = vadd.f32 %v2475_v44, %v2994_v48  ;;  %v832_v44 = vmax.f32 %v558_v3, 0.0  ;;  %v828_v57 = vmax.f32 %v538_v43, 0.0  ;;  %v841_v3 = vmax.f32 %v603_v19, 0.0 }
 0x109   :  { %v632_v45 = vpop.f32.mrf.mxu0  ;;  %v3109_v43 = vadd.s32 48, %v2895_v4 }
 0x10a   :  { %v633_v7 = vadd.f32 %v2994_v48, %v632_v45  ;;  %v848_v28 = vmax.f32 %v638_v1, 0.0 }
 0x10b   :  { %v2478_v46 = vpop.f32.mrf.mxu0 }
 0x10c   :  { %v648_v54 = vadd.f32 %v2478_v46, %v2994_v48  ;;  %v847_v46 = vmax.f32 %v633_v7, 0.0 }
 0x10d   :  { %v642_v47 = vpop.f32.mrf.mxu0 }
 0x10e   :  { %v643_v60 = vadd.f32 %v2994_v48, %v642_v47  ;;  %v850_v2 = vmax.f32 %v648_v54, 0.0  ;;  %v543_v47 = vadd.f32 %v2994_v48, %v2932_v21  ;;  %v613_v21 = vadd.f32 %v2994_v48, %v2989_v41 }
 0x10f   :  { %v2481_v50 = vpop.f32.mrf.mxu0  ;;  %v528_v41 = vadd.f32 %v2922_v16, %v2994_v48  ;;  %v598_v16 = vadd.f32 %v2964_v35, %v2994_v48  ;;  %v513_v35 = vadd.f32 %v2994_v48, %v2920_v15  ;;  %v583_v15 = vadd.f32 %v2994_v48, %v2958_v34 }
 0x110   :  { %v658_v51 = vadd.f32 %v2481_v50, %v2994_v48  ;;  %v849_v24 = vmax.f32 %v643_v60, 0.0  ;;  %v846_v50 = vmax.f32 %v628_v22, 0.0  ;;  %v829_v54 = vmax.f32 %v543_v47, 0.0 }
 0x111   :  { %v652_v53 = vpop.f32.mrf.mxu0  ;;  %v843_v60 = vmax.f32 %v613_v21, 0.0  ;;  %v826_v1 = vmax.f32 %v528_v41, 0.0  ;;  %v839_v22 = vmax.f32 %v593_v17, 0.0  ;;  %v837_v34 = vmax.f32 %v583_v15, 0.0 }
 0x112   :  { %v852_v55 = vmax.f32 %v658_v51, 0.0  ;;  %v653_v56 = vadd.f32 %v2994_v48, %v652_v53  ;;  %v830_v51 = vmax.f32 %v548_v30, 0.0  ;;  %v845_v53 = vmax.f32 %v623_v23, 0.0 }
 0x113   :  { %v3002_v59 = vpop.f32.mrf.mxu0  ;;  %v822_v23 = vmax.f32 %v508_v37, 0.0  ;;  %v3187_v17 = vadd.s32 96, %v2895_v4 }
 0x114   :  { %v851_v61 = vmax.f32 %v653_v56, 0.0  ;;  %2220 = vmatprep.subr.mxu0 %v852_v55  ;;  %2614 = vmatprep.subr.mxu1 %v852_v55  ;;  %v844_v56 = vmax.f32 %v618_v20, 0.0 }
 0x115   :  { %v3006_v0 = vpop.f32.mrf.mxu0  ;;  %2221 = vmatpush3.msra.mxu0 %v836_v58  ;;  %2630 = vmatpush3.msra.mxu1 %v836_v58 }
 0x116   :  { %2222 = vmatprep.subr.mxu0 %v851_v61  ;;  %2615 = vmatprep.subr.mxu1 %v851_v61  ;;  %v827_v61 = vmax.f32 %v533_v40, 0.0 }
 0x117   :  { %v3011_v6 = vpop.f32.mrf.mxu0  ;;  %2223 = vmatpush3.msra.mxu0 %v835_v63  ;;  %2631 = vmatpush3.msra.mxu1 %v835_v63  ;;  %v842_v63 = vmax.f32 %v608_v18, 0.0  ;;  %v3147_v18 = vadd.s32 64, %v2895_v4 }
 0x118   :  { %2224 = vmatprep.subr.mxu0 %v850_v2  ;;  %2616 = vmatprep.subr.mxu1 %v850_v2 }
 0x119   :  { %v3016_v27 = vpop.f32.mrf.mxu0  ;;  %2225 = vmatpush3.msra.mxu0 %v834_v5  ;;  %2632 = vmatpush3.msra.mxu1 %v834_v5  ;;  %v825_v5 = vmax.f32 %v523_v38, 0.0  ;;  %v3171_v38 = vadd.s32 80, %v2895_v4 }
 0x11a   :  { %2226 = vmatprep.subr.mxu0 %v849_v24  ;;  %2617 = vmatprep.subr.mxu1 %v849_v24  ;;  %v840_v24 = vmax.f32 %v598_v16, 0.0 }
 0x11b   :  { %v3021_v45 = vpop.f32.mrf.mxu0  ;;  %2227 = vmatpush3.msra.mxu0 %v833_v26  ;;  %2633 = vmatpush3.msra.mxu1 %v833_v26 }
 0x11c   :  { %2228 = vmatprep.subr.mxu0 %v848_v28  ;;  %2618 = vmatprep.subr.mxu1 %v848_v28  ;;  %v823_v28 = vmax.f32 %v513_v35, 0.0 }
 0x11d   :  { %v3026_v49 = vpop.f32.mrf.mxu0  ;;  %2229 = vmatpush3.msra.mxu0 %v832_v44  ;;  %2634 = vmatpush3.msra.mxu1 %v832_v44  ;;  %v3077_v44 = vadd.s32 32, %v2895_v4 }
 0x11e   :  { %2230 = vmatprep.subr.mxu0 %v847_v46  ;;  %2619 = vmatprep.subr.mxu1 %v847_v46 }
 0x11f   :  { %v3032_v52 = vpop.f32.mrf.mxu0  ;;  %2231 = vmatpush3.msra.mxu0 %v831_v42  ;;  %2635 = vmatpush3.msra.mxu1 %v831_v42  ;;  %vm939_vm15 = vcmp.eq.s32.totalorder %v3077_v44, %v2907_v9  ;;  %v3088_v42 = vadd.s32 40, %v2895_v4  ;;  %vm938_vm0 = vcmp.eq.s32.totalorder %v3077_v44, %v2909_v10 }
 0x120   :  { %2232 = vmatprep.subr.mxu0 %v846_v50  ;;  %2620 = vmatprep.subr.mxu1 %v846_v50 }
 0x121   :  { %v3038_v55 = vpop.f32.mrf.mxu0  ;;  %2233 = vmatpush3.msra.mxu0 %v830_v51  ;;  %2636 = vmatpush3.msra.mxu1 %v830_v51  ;;  %vm943_vm1 = vcmp.eq.s32.totalorder %v3088_v42, %v2907_v9  ;;  %vm942_vm3 = vcmp.eq.s32.totalorder %v3088_v42, %v2909_v10 }
 0x122   :  { %2234 = vmatprep.subr.mxu0 %v845_v53  ;;  %2621 = vmatprep.subr.mxu1 %v845_v53  ;;  %v3130_v53 = vadd.s32 56, %v2895_v4 }
 0x123   :  { %v3044_v58 = vpop.f32.mrf.mxu0  ;;  %2235 = vmatpush3.msra.mxu0 %v829_v54  ;;  %2637 = vmatpush3.msra.mxu1 %v829_v54 }
 0x124   :  { %2236 = vmatprep.subr.mxu0 %v844_v56  ;;  %2622 = vmatprep.subr.mxu1 %v844_v56 }
 0x125   :  { %v3050_v62 = vpop.f32.mrf.mxu0  ;;  %2237 = vmatpush3.msra.mxu0 %v828_v57  ;;  %2638 = vmatpush3.msra.mxu1 %v828_v57  ;;  %v3160_v57 = vadd.s32 72, %v2895_v4 }
 0x126   :  { %2238 = vmatprep.subr.mxu0 %v843_v60  ;;  %2623 = vmatprep.subr.mxu1 %v843_v60 }
 0x127   :  { %v3056_v2 = vpop.f32.mrf.mxu0  ;;  %2239 = vmatpush3.msra.mxu0 %v827_v61  ;;  %2639 = vmatpush3.msra.mxu1 %v827_v61 }
 0x128   :  { %2240 = vmatprep.subr.mxu0 %v842_v63  ;;  %2624 = vmatprep.subr.mxu1 %v842_v63  ;;  %v3180_v63 = vadd.s32 88, %v2895_v4 }
 0x129   :  { %v3062_v7 = vpop.f32.mrf.mxu0  ;;  %2241 = vmatpush3.msra.mxu0 %v826_v1  ;;  %2640 = vmatpush3.msra.mxu1 %v826_v1 }
 0x12a   :  { %2242 = vmatprep.subr.mxu0 %v841_v3  ;;  %2625 = vmatprep.subr.mxu1 %v841_v3 }
 0x12b   :  { %v3068_v26 = vpop.f32.mrf.mxu0  ;;  %2243 = vmatpush3.msra.mxu0 %v825_v5  ;;  %2641 = vmatpush3.msra.mxu1 %v825_v5 }
 0x12c   :  { %2244 = vmatprep.subr.mxu0 %v840_v24  ;;  %2626 = vmatprep.subr.mxu1 %v840_v24  ;;  %v728_v32 = vadd.f32 %v3068_v26, %v2994_v48 }
 0x12d   :  { %v3074_v30 = vpop.f32.mrf.mxu0  ;;  %2245 = vmatpush3.msra.mxu0 %v824_v25  ;;  %2642 = vmatpush3.msra.mxu1 %v824_v25 }
 0x12e   :  { %2246 = vmatprep.subr.mxu0 %v839_v22  ;;  %2627 = vmatprep.subr.mxu1 %v839_v22  ;;  %v3205_v22 = vadd.s32 104, %v2895_v4 }
 0x12f   :  { %v3079_v46 = vpop.f32.mrf.mxu0  ;;  %2247 = vmatpush3.msra.mxu0 %v823_v28  ;;  %2643 = vmatpush3.msra.mxu1 %v823_v28 }
 0x130   :  { %2248 = vmatprep.subr.mxu0 %v838_v12  ;;  %2628 = vmatprep.subr.mxu1 %v838_v12  ;;  %v738_v3 = vadd.f32 %v3079_v46, %v2994_v48  ;;  %v723_v46 = vadd.f32 %v2994_v48, %v3074_v30  ;;  %v718_v30 = vadd.f32 %v3056_v2, %v2994_v48 }
 0x131   :  { %v3081_v47 = vpop.f32.mrf.mxu0  ;;  %2249 = vmatpush3.msra.mxu0 %v822_v23  ;;  %2644 = vmatpush3.msra.mxu1 %v822_v23 }
 0x132   :  { %2250 = vmatprep.subr.mxu0 %v837_v34  ;;  %2629 = vmatprep.subr.mxu1 %v837_v34  ;;  %v733_v14 = vadd.f32 %v2994_v48, %v3081_v47  ;;  %v868_v28 = vmax.f32 %v738_v3, 0.0  ;;  %v3220_v47 = vadd.s32 112, %v2895_v4 }
 0x133   :  { %v3090_v20 = vpop.f32.mrf.mxu0  ;;  %2251 = vmatpush3.msra.mxu0 %v821_v13  ;;  %2645 = vmatpush3.msra.mxu1 %v821_v13 }
 0x134   :  { %2073 = vmatmul.mubr.msk.f32.vlgmr.msra.gmra.mxu1 %vm934_vm14, %v2674_v11  ;;  %2067 = vmatmul.mubr.msk.f32.vlgmr.msra.gmra.mxu0 %vm922_vm5, %v2674_v11  ;;  %vm947_vm5 = vcmp.eq.s32.totalorder %v3109_v43, %v2907_v9  ;;  %vm954_vm14 = vcmp.eq.s32.totalorder %v3147_v18, %v2909_v10  ;;  %v867_v34 = vmax.f32 %v733_v14, 0.0  ;;  %v864_v14 = vmax.f32 %v718_v30, 0.0 }
 0x135   :  { %v3097_v50 = vpop.f32.mrf.mxu0  ;;  %2074 = vmatprep.mubr.msk.f32.mxu1 %vm939_vm15, %v2674_v11  ;;  %2068 = vmatprep.mubr.msk.f32.mxu0 %vm927_vm8, %v2674_v11  ;;  %vm946_vm8 = vcmp.eq.s32.totalorder %v3109_v43, %v2909_v10  ;;  %vm959_vm15 = vcmp.eq.s32.totalorder %v3160_v57, %v2907_v9  ;;  %v673_v30 = vadd.f32 %v2994_v48, %v3016_v27 }
 0x136   :  { %v663_v27 = vadd.f32 %v2994_v48, %v3006_v0 }
 0x137   :  { %v3111_v51 = vpop.f32.mrf.mxu0 }
 0x138   :  { %2075 = vmatmul.mubr.msk.f32.gmra.mxu1 %vm938_vm0, %v2674_v11  ;;  %2069 = vmatmul.mubr.msk.f32.gmra.mxu0 %vm926_vm9, %v2674_v11  ;;  %vm951_vm9 = vcmp.eq.s32.totalorder %v3130_v53, %v2907_v9  ;;  %vm958_vm0 = vcmp.eq.s32.totalorder %v3160_v57, %v2909_v10 }
 0x139   :  { %v3118_v21 = vpop.f32.mrf.mxu0  ;;  %2076 = vmatprep.mubr.msk.f32.mxu1 %vm943_vm1, %v2674_v11  ;;  %2070 = vmatprep.mubr.msk.f32.mxu0 %vm931_vm12, %v2674_v11  ;;  %vm950_vm12 = vcmp.eq.s32.totalorder %v3130_v53, %v2909_v10  ;;  %vm963_vm1 = vcmp.eq.s32.totalorder %v3171_v38, %v2907_v9 }
 0x13b   :  { %v3132_v40 = vpop.f32.mrf.mxu0 }
 0x13c   :  { %2077 = vmatmul.mubr.msk.f32.gmra.mxu1 %vm942_vm3, %v2674_v11  ;;  %2071 = vmatmul.mubr.msk.f32.gmra.mxu0 %vm930_vm13, %v2674_v11  ;;  %vm955_vm13 = vcmp.eq.s32.totalorder %v3147_v18, %v2907_v9  ;;  %vm962_vm3 = vcmp.eq.s32.totalorder %v3171_v38, %v2909_v10 }
 0x13d   :  { %v3139_v54 = vpop.f32.mrf.mxu0  ;;  %2078 = vmatprep.mubr.msk.f32.mxu1 %vm947_vm5, %v2674_v11  ;;  %vm967_vm5 = vcmp.eq.s32.totalorder %v3180_v63, %v2907_v9 }
 0x13f   :  { %v3149_v56 = vpop.f32.mrf.mxu0 }
 0x140   :  { %2079 = vmatmul.mubr.msk.f32.gmra.mxu1 %vm946_vm8, %v2674_v11  ;;  %vm966_vm8 = vcmp.eq.s32.totalorder %v3180_v63, %v2909_v10 }
 0x141   :  { %v3152_v41 = vpop.f32.mrf.mxu0  ;;  %2080 = vmatprep.mubr.msk.f32.mxu1 %vm951_vm9, %v2674_v11  ;;  %vm971_vm9 = vcmp.eq.s32.totalorder %v3187_v17, %v2907_v9 }
 0x143   :  { %v2520_v19 = vpop.f32.mrf.mxu0 }
 0x144   :  { %2081 = vmatmul.mubr.msk.f32.gmra.mxu1 %vm950_vm12, %v2674_v11  ;;  %vm970_vm12 = vcmp.eq.s32.totalorder %v3187_v17, %v2909_v10  ;;  %v788_v2 = vadd.f32 %v2520_v19, %v2994_v48  ;;  %v703_v19 = vadd.f32 %v2994_v48, %v3050_v62  ;;  %v773_v62 = vadd.f32 %v2994_v48, %v3152_v41 }
 0x145   :  { %v3163_v60 = vpop.f32.mrf.mxu0  ;;  %2082 = vmatprep.mubr.msk.f32.mxu1 %vm955_vm13, %v2674_v11  ;;  %vm975_vm13 = vcmp.eq.s32.totalorder %v3205_v22, %v2907_v9  ;;  %v688_v41 = vadd.f32 %v3021_v45, %v2994_v48  ;;  %v758_v45 = vadd.f32 %v3111_v51, %v2994_v48  ;;  %v748_v51 = vadd.f32 %v3090_v20, %v2994_v48 }
 0x147   :  { %v2523_v61 = vpop.f32.mrf.mxu0 }
 0x148   :  { %2083 = vmatmul.mubr.msk.f32.gmra.mxu1 %vm954_vm14, %v2674_v11  ;;  %v798_v13 = vadd.f32 %v2523_v61, %v2994_v48  ;;  %v713_v61 = vadd.f32 %v2994_v48, %v3062_v7  ;;  %vm974_vm14 = vcmp.eq.s32.totalorder %v3205_v22, %v2909_v10  ;;  %v708_v7 = vadd.f32 %v3044_v58, %v2994_v48 }
 0x149   :  { %v792_v16 = vpop.f32.mrf.mxu0  ;;  %2084 = vmatprep.mubr.msk.f32.mxu1 %vm959_vm15, %v2674_v11  ;;  %vm979_vm15 = vcmp.eq.s32.totalorder %v3220_v47, %v2907_v9  ;;  %v778_v58 = vadd.f32 %v3149_v56, %v2994_v48  ;;  %v693_v56 = vadd.f32 %v2994_v48, %v3038_v55  ;;  %v763_v55 = vadd.f32 %v2994_v48, %v3139_v54 }
 0x14a   :  { %v678_v54 = vadd.f32 %v3011_v6, %v2994_v48  ;;  %v668_v6 = vadd.f32 %v3002_v59, %v2994_v48 }
 0x14b   :  { %v2526_v39 = vpop.f32.mrf.mxu0 }
 0x14c   :  { %2085 = vmatmul.mubr.msk.f32.gmra.mxu1 %vm958_vm0, %v2674_v11  ;;  %v808_v37 = vadd.f32 %v2526_v39, %v2994_v48  ;;  %v866_v39 = vmax.f32 %v728_v32, 0.0  ;;  %vm978_vm0 = vcmp.eq.s32.totalorder %v3220_v47, %v2909_v10  ;;  %v862_v32 = vmax.f32 %v708_v7, 0.0 }
 0x14d   :  { %v802_v1 = vpop.f32.mrf.mxu0  ;;  %2086 = vmatprep.mubr.msk.f32.mxu1 %vm963_vm1, %v2674_v11  ;;  %v854_v20 = vmax.f32 %v668_v6, 0.0  ;;  %v853_v7 = vmax.f32 %v663_v27, 0.0 }
 0x14e   :  { %v803_v12 = vadd.f32 %v2994_v48, %v802_v1  ;;  %v882_v26 = vmax.f32 %v808_v37, 0.0  ;;  %v793_v1 = vadd.f32 %v2994_v48, %v792_v16  ;;  %v3235_v16 = vadd.s32 120, %v2895_v4 }
 0x14f   :  { %v2529_v35 = vpop.f32.mrf.mxu0 }
 0x150   :  { %v818_v5 = vadd.f32 %v2529_v35, %v2994_v48  ;;  %2087 = vmatmul.mubr.msk.f32.gmra.mxu1 %vm962_vm3, %v2674_v11  ;;  %v881_v3 = vmax.f32 %v803_v12, 0.0  ;;  %v865_v35 = vmax.f32 %v723_v46, 0.0  ;;  %v879_v37 = vmax.f32 %v793_v1, 0.0 }
 0x151   :  { %v812_v24 = vpop.f32.mrf.mxu0  ;;  %2088 = vmatprep.mubr.msk.f32.mxu1 %vm967_vm5, %v2674_v11  ;;  %vm983_vm1 = vcmp.eq.s32.totalorder %v3235_v16, %v2907_v9  ;;  %v861_v12 = vmax.f32 %v703_v19, 0.0  ;;  %vm982_vm3 = vcmp.eq.s32.totalorder %v3235_v16, %v2909_v10  ;;  %v768_v9 = vadd.f32 %v3132_v40, %v2994_v48 }
 0x152   :  { %v884_v25 = vmax.f32 %v818_v5, 0.0  ;;  %v813_v15 = vadd.f32 %v2994_v48, %v812_v24  ;;  %v880_v5 = vmax.f32 %v798_v13, 0.0  ;;  %v783_v24 = vadd.f32 %v2994_v48, %v3163_v60 }
 0x153   :  { %v698_v60 = vadd.f32 %v3032_v52, %v2994_v48  ;;  %v876_v52 = vmax.f32 %v778_v58, 0.0  ;;  %v875_v46 = vmax.f32 %v773_v62, 0.0  ;;  %v683_v10 = vadd.f32 %v2994_v48, %v3026_v49 }
 0x154   :  { %v883_v23 = vmax.f32 %v813_v15, 0.0  ;;  %2300 = vmatprep.subr.mxu1 %v884_v25  ;;  %2089 = vmatmul.mubr.msk.f32.gmra.mxu1 %vm966_vm8, %v2674_v11  ;;  %v863_v25 = vmax.f32 %v713_v61, 0.0  ;;  %v878_v15 = vmax.f32 %v788_v2, 0.0  ;;  %v874_v40 = vmax.f32 %v768_v9, 0.0 }
 0x155   :  { %2301 = vmatpush3.msra.mxu1 %v868_v28  ;;  %2090 = vmatprep.mubr.msk.f32.mxu1 %vm971_vm9, %v2674_v11  ;;  %v877_v28 = vmax.f32 %v783_v24, 0.0  ;;  %v858_v13 = vmax.f32 %v688_v41, 0.0  ;;  %v753_v49 = vadd.f32 %v2994_v48, %v3118_v21  ;;  %v872_v1 = vmax.f32 %v758_v45, 0.0 }
 0x156   :  { %2302 = vmatprep.subr.mxu1 %v883_v23  ;;  %v860_v23 = vmax.f32 %v698_v60, 0.0  ;;  %v743_v21 = vadd.f32 %v2994_v48, %v3097_v50  ;;  %v870_v2 = vmax.f32 %v748_v51, 0.0  ;;  %vm949_vm5 = vcmp.eq.s32.totalorder %v3109_v43, %v2940_v29 }
 0x157   :  { %2303 = vmatpush3.msra.mxu1 %v867_v34  ;;  %v859_v34 = vmax.f32 %v693_v56, 0.0  ;;  %v871_v61 = vmax.f32 %v753_v49, 0.0  ;;  %vm948_vm8 = vcmp.eq.s32.totalorder %v3109_v43, %v2942_v31  ;;  %vm953_vm9 = vcmp.eq.s32.totalorder %v3130_v53, %v2940_v29 }
 0x158   :  { %2304 = vmatprep.subr.mxu1 %v882_v26  ;;  %2091 = vmatmul.mubr.msk.f32.gmra.mxu1 %vm970_vm12, %v2674_v11  ;;  %v873_v26 = vmax.f32 %v763_v55, 0.0  ;;  %vm952_vm12 = vcmp.eq.s32.totalorder %v3130_v53, %v2942_v31 }
 0x159   :  { %2305 = vmatpush3.msra.mxu1 %v866_v39  ;;  %2092 = vmatprep.mubr.msk.f32.mxu1 %vm975_vm13, %v2674_v11  ;;  %v857_v39 = vmax.f32 %v683_v10, 0.0  ;;  %vm957_vm13 = vcmp.eq.s32.totalorder %v3147_v18, %v2940_v29 }
 0x15a   :  { %2306 = vmatprep.subr.mxu1 %v881_v3  ;;  %v856_v3 = vmax.f32 %v678_v54, 0.0 }
 0x15b   :  { %2307 = vmatpush3.msra.mxu1 %v865_v35  ;;  %v855_v35 = vmax.f32 %v673_v30, 0.0 }
 0x15c   :  { %2308 = vmatprep.subr.mxu1 %v880_v5  ;;  %2093 = vmatmul.mubr.msk.f32.gmra.mxu1 %vm974_vm14, %v2674_v11  ;;  %v869_v5 = vmax.f32 %v743_v21, 0.0  ;;  %vm956_vm14 = vcmp.eq.s32.totalorder %v3147_v18, %v2942_v31 }
 0x15d   :  { %2309 = vmatpush3.msra.mxu1 %v864_v14  ;;  %2094 = vmatprep.mubr.msk.f32.mxu1 %vm979_vm15, %v2674_v11  ;;  %vm961_vm15 = vcmp.eq.s32.totalorder %v3160_v57, %v2940_v29 }
 0x15e   :  { %2310 = vmatprep.subr.mxu1 %v879_v37 }
 0x15f   :  { %2311 = vmatpush3.msra.mxu1 %v863_v25 }
 0x160   :  { %2312 = vmatprep.subr.mxu1 %v878_v15  ;;  %2095 = vmatmul.mubr.msk.f32.gmra.mxu1 %vm978_vm0, %v2674_v11  ;;  %vm960_vm0 = vcmp.eq.s32.totalorder %v3160_v57, %v2942_v31 }
 0x161   :  { %2313 = vmatpush3.msra.mxu1 %v862_v32  ;;  %2096 = vmatprep.mubr.msk.f32.mxu1 %vm983_vm1, %v2674_v11  ;;  %vm965_vm1 = vcmp.eq.s32.totalorder %v3171_v38, %v2940_v29 }
 0x162   :  { %2314 = vmatprep.subr.mxu1 %v877_v28 }
 0x163   :  { %2315 = vmatpush3.msra.mxu1 %v861_v12 }
 0x164   :  { %2316 = vmatprep.subr.mxu1 %v876_v52  ;;  %2097 = vmatmul.mubr.msk.f32.gmra.mxu1 %vm982_vm3, %v2674_v11  ;;  %vm964_vm3 = vcmp.eq.s32.totalorder %v3171_v38, %v2942_v31 }
 0x165   :  { %2317 = vmatpush3.msra.mxu1 %v860_v23  ;;  %2098 = vmatprep.mubr.msk.f32.mxu1 %vm925_vm2, %v2674_v11  ;;  %vm937_vm2 = vcmp.eq.s32.totalorder %v2905_v8, %v2940_v29 }
 0x166   :  { %2318 = vmatprep.subr.mxu1 %v875_v46 }
 0x167   :  { %2319 = vmatpush3.msra.mxu1 %v859_v34 }
 0x168   :  { %2320 = vmatprep.subr.mxu1 %v874_v40 }
 0x169   :  { %2321 = vmatpush3.msra.mxu1 %v858_v13 }
 0x16a   :  { %2322 = vmatprep.subr.mxu1 %v873_v26  ;;  %v1114_v26 = vld [vmem:[#allocation2 + $0x30] sm:$0xff] }
 0x16b   :  { %2323 = vmatpush3.msra.mxu1 %v857_v39 }
 0x16c   :  { %2324 = vmatprep.subr.mxu1 %v872_v1 }
 0x16d   :  { %2325 = vmatpush3.msra.mxu1 %v856_v3 }
 0x16e   :  { %2326 = vmatprep.subr.mxu1 %v871_v61  ;;  %v1115_v61 = vld [vmem:[#allocation2] sm:$0xff] }
 0x16f   :  { %2327 = vmatpush3.msra.mxu1 %v855_v35 }
 0x170   :  { %2328 = vmatprep.subr.mxu1 %v870_v2 }
 0x171   :  { %2329 = vmatpush3.msra.mxu1 %v854_v20 }
 0x172   :  { %2330 = vmatprep.subr.mxu1 %v869_v5 }
 0x173   :  { %2331 = vmatpush3.msra.mxu1 %v853_v7 }
 0x174   :  { %2099 = vmatmul.mubr.msk.f32.vlgmr.msra.gmra.mxu1 %vm924_vm4, %v2674_v11  ;;  %vm936_vm4 = vcmp.eq.s32.totalorder %v2905_v8, %v2942_v31 }
 0x175   :  { %2100 = vmatprep.mubr.msk.f32.mxu1 %vm929_vm6, %v2674_v11  ;;  %vm941_vm6 = vcmp.eq.s32.totalorder %v3077_v44, %v2940_v29 }
 0x178   :  { %2101 = vmatmul.mubr.msk.f32.gmra.mxu1 %vm928_vm7, %v2674_v11  ;;  %vm940_vm7 = vcmp.eq.s32.totalorder %v3077_v44, %v2942_v31 }
 0x179   :  { %2102 = vmatprep.mubr.msk.f32.mxu1 %vm933_vm10, %v2674_v11  ;;  %vm945_vm10 = vcmp.eq.s32.totalorder %v3088_v42, %v2940_v29 }
 0x17c   :  { %2103 = vmatmul.mubr.msk.f32.gmra.mxu1 %vm932_vm11, %v2674_v11  ;;  %vm944_vm11 = vcmp.eq.s32.totalorder %v3088_v42, %v2942_v31 }
 0x17d   :  { %2104 = vmatprep.mubr.msk.f32.mxu1 %vm937_vm2, %v2674_v11  ;;  %vm969_vm2 = vcmp.eq.s32.totalorder %v3180_v63, %v2940_v29 }
 0x180   :  { %2105 = vmatmul.mubr.msk.f32.gmra.mxu1 %vm936_vm4, %v2674_v11  ;;  %vm968_vm4 = vcmp.eq.s32.totalorder %v3180_v63, %v2942_v31 }
 0x181   :  { %2106 = vmatprep.mubr.msk.f32.mxu1 %vm941_vm6, %v2674_v11  ;;  %vm973_vm6 = vcmp.eq.s32.totalorder %v3187_v17, %v2940_v29 }
 0x184   :  { %2107 = vmatmul.mubr.msk.f32.gmra.mxu1 %vm940_vm7, %v2674_v11  ;;  %vm972_vm7 = vcmp.eq.s32.totalorder %v3187_v17, %v2942_v31 }
 0x185   :  { %2108 = vmatprep.mubr.msk.f32.mxu1 %vm945_vm10, %v2674_v11  ;;  %vm977_vm10 = vcmp.eq.s32.totalorder %v3205_v22, %v2940_v29 }
 0x188   :  { %2109 = vmatmul.mubr.msk.f32.gmra.mxu1 %vm944_vm11, %v2674_v11  ;;  %vm976_vm11 = vcmp.eq.s32.totalorder %v3205_v22, %v2942_v31 }
 0x189   :  { %2110 = vmatprep.mubr.msk.f32.mxu1 %vm949_vm5, %v2674_v11  ;;  %vm981_vm5 = vcmp.eq.s32.totalorder %v3220_v47, %v2940_v29 }
 0x18c   :  { %2111 = vmatmul.mubr.msk.f32.gmra.mxu1 %vm948_vm8, %v2674_v11  ;;  %vm980_vm8 = vcmp.eq.s32.totalorder %v3220_v47, %v2942_v31 }
 0x18d   :  { %2112 = vmatprep.mubr.msk.f32.mxu1 %vm953_vm9, %v2674_v11  ;;  %vm985_vm9 = vcmp.eq.s32.totalorder %v3235_v16, %v2940_v29 }
 0x190   :  { %2113 = vmatmul.mubr.msk.f32.gmra.mxu1 %vm952_vm12, %v2674_v11  ;;  %vm984_vm12 = vcmp.eq.s32.totalorder %v3235_v16, %v2942_v31 }
 0x191   :  { %2114 = vmatprep.mubr.msk.f32.mxu1 %vm957_vm13, %v2674_v11 }
 0x194   :  { %2115 = vmatmul.mubr.msk.f32.gmra.mxu1 %vm956_vm14, %v2674_v11 }
 0x195   :  { %2116 = vmatprep.mubr.msk.f32.mxu1 %vm961_vm15, %v2674_v11 }
 0x198   :  { %2117 = vmatmul.mubr.msk.f32.gmra.mxu1 %vm960_vm0, %v2674_v11 }
 0x199   :  { %2118 = vmatprep.mubr.msk.f32.mxu1 %vm965_vm1, %v2674_v11 }
 0x19c   :  { %2119 = vmatmul.mubr.msk.f32.gmra.mxu1 %vm964_vm3, %v2674_v11 }
 0x19d   :  { %2120 = vmatprep.mubr.msk.f32.mxu1 %vm969_vm2, %v2674_v11 }
 0x1a0   :  { %2121 = vmatmul.mubr.msk.f32.gmra.mxu1 %vm968_vm4, %v2674_v11 }
 0x1a1   :  { %2122 = vmatprep.mubr.msk.f32.mxu1 %vm973_vm6, %v2674_v11 }
 0x1a4   :  { %2123 = vmatmul.mubr.msk.f32.gmra.mxu1 %vm972_vm7, %v2674_v11 }
 0x1a5   :  { %2124 = vmatprep.mubr.msk.f32.mxu1 %vm977_vm10, %v2674_v11 }
 0x1a8   :  { %2125 = vmatmul.mubr.msk.f32.gmra.mxu1 %vm976_vm11, %v2674_v11 }
 0x1a9   :  { %2126 = vmatprep.mubr.msk.f32.mxu1 %vm981_vm5, %v2674_v11 }
 0x1ac   :  { %2127 = vmatmul.mubr.msk.f32.gmra.mxu1 %vm980_vm8, %v2674_v11 }
 0x1ad   :  { %2128 = vmatprep.mubr.msk.f32.mxu1 %vm985_vm9, %v2674_v11 }
 0x1b0   :  { %2129 = vmatmul.mubr.msk.f32.gmra.mxu1 %vm984_vm12, %v2674_v11 }
 0x1f4   :  { %v2261_v4 = vpop.f32.mrf.mxu1  ;;  %v2252_v41 = vpop.f32.mrf.mxu0 }
 0x1f6   :  { %v2262_v8 = vpop.f32.mrf.mxu1  ;;  %v2253_v55 = vpop.f32.mrf.mxu0 }
 0x1f7   :  { %v3388_v33 = vadd.f32 %v2262_v8, %v2261_v4  ;;  %v2254_v45 = vadd.f32 %v2253_v55, %v2252_v41  ;;  %v1116_v4 = vld [vmem:[#allocation2 + $0x58] sm:$0xff] }
 0x1f8   :  { %v2264_v36 = vpop.f32.mrf.mxu1  ;;  %v2255_v46 = vpop.f32.mrf.mxu0 }
 0x1fa   :  { %v2265_v48 = vpop.f32.mrf.mxu1  ;;  %v2256_v10 = vpop.f32.mrf.mxu0 }
 0x1fb   :  { %v3390_v59 = vadd.f32 %v2265_v48, %v2264_v36  ;;  %v2257_v39 = vadd.f32 %v2256_v10, %v2255_v46 }
 0x1fc   :  { %v2267_v0 = vpop.f32.mrf.mxu1  ;;  %v2258_v54 = vpop.f32.mrf.mxu0 }
 0x1fe   :  { %v2268_v44 = vpop.f32.mrf.mxu1  ;;  %v2259_v1 = vpop.f32.mrf.mxu0 }
 0x1ff   :  { %v3392_v29 = vadd.f32 %v2268_v44, %v2267_v0  ;;  %v2260_v35 = vadd.f32 %v2259_v1, %v2258_v54  ;;  %v1117_v44 = vld [vmem:[#allocation2 + $0x18] sm:$0xff] }
 0x200   :  { %v2270_v42 = vpop.f32.mrf.mxu1 }
 0x202   :  { %v2271_v50 = vpop.f32.mrf.mxu1 }
 0x203   :  { %v3394_v43 = vadd.f32 %v2271_v50, %v2270_v42 }
 0x204   :  { %v2273_v53 = vpop.f32.mrf.mxu1 }
 0x206   :  { %v2274_v31 = vpop.f32.mrf.mxu1 }
 0x207   :  { %v3396_v18 = vadd.f32 %v2274_v31, %v2273_v53 }
 0x208   :  { %v2276_v11 = vpop.f32.mrf.mxu1 }
 0x20a   :  { %v2277_v57 = vpop.f32.mrf.mxu1 }
 0x20b   :  { %v3398_v38 = vadd.f32 %v2277_v57, %v2276_v11  ;;  %v1118_v57 = vld [vmem:[#allocation2 + $0x50] sm:$0xff] }
 0x20c   :  { %v2279_v63 = vpop.f32.mrf.mxu1 }
 0x20e   :  { %v2280_v17 = vpop.f32.mrf.mxu1 }
 0x20f   :  { %v3400_v22 = vadd.f32 %v2280_v17, %v2279_v63 }
 0x210   :  { %v2282_v47 = vpop.f32.mrf.mxu1 }
 0x212   :  { %v2283_v16 = vpop.f32.mrf.mxu1 }
 0x213   :  { %v3402_v14 = vadd.f32 %v2283_v16, %v2282_v47 }
 0x214   :  { %v2285_v24 = vpop.f32.mrf.mxu1 }
 0x216   :  { %v2286_v37 = vpop.f32.mrf.mxu1 }
 0x217   :  { %v3404_v19 = vadd.f32 %v2286_v37, %v2285_v24  ;;  %v1119_v37 = vld [vmem:[#allocation2 + $0x68] sm:$0xff] }
 0x218   :  { %v2288_v25 = vpop.f32.mrf.mxu1 }
 0x21a   :  { %v2289_v58 = vpop.f32.mrf.mxu1 }
 0x21b   :  { %v3406_v15 = vadd.f32 %v2289_v58, %v2288_v25 }
 0x21c   :  { %v2291_v60 = vpop.f32.mrf.mxu1 }
 0x21e   :  { %v2292_v32 = vpop.f32.mrf.mxu1 }
 0x21f   :  { %v3408_v62 = vadd.f32 %v2292_v32, %v2291_v60 }
 0x220   :  { %v2294_v28 = vpop.f32.mrf.mxu1 }
 0x222   :  { %v2295_v56 = vpop.f32.mrf.mxu1 }
 0x223   :  { %v3410_v12 = vadd.f32 %v2295_v56, %v2294_v28  ;;  %v1120_v28 = vld [vmem:[#allocation2 + $0x8] sm:$0xff] }
 0x224   :  { %v2297_v9 = vpop.f32.mrf.mxu1 }
 0x226   :  { %v2298_v52 = vpop.f32.mrf.mxu1 }
 0x227   :  { %v3412_v23 = vadd.f32 %v2298_v52, %v2297_v9 }
 0x234   :  { %v2332_v34 = vpop.f32.mrf.mxu1 }
 0x236   :  { %v2333_v40 = vpop.f32.mrf.mxu1 }
 0x237   :  { %v2334_v13 = vadd.f32 %v2333_v40, %v2332_v34 }
 0x238   :  { %v2335_v49 = vpop.f32.mrf.mxu1 }
 0x239   :  { %v1342_v30 = vadd.f32 %v2334_v13, %v2254_v45 }
 0x23a   :  { %v2336_v51 = vpop.f32.mrf.mxu1 }
 0x23b   :  { %v2337_v6 = vadd.f32 %v2336_v51, %v2335_v49  ;;  %v1420_v3 = vadd.f32 %v1342_v30, %v1114_v26 }
 0x23c   :  { %v2338_v21 = vpop.f32.mrf.mxu1 }
 0x23d   :  { %1436 = vst [vmem:[#allocation2 + $0x30] sm:$0xff] %v1420_v3  ;;  %v1347_v27 = vadd.f32 %v2337_v6, %v2257_v39 }
 0x23e   :  { %v2339_v2 = vpop.f32.mrf.mxu1 }
 0x23f   :  { %v2340_v20 = vadd.f32 %v2339_v2, %v2338_v21  ;;  %v1421_v5 = vadd.f32 %v1347_v27, %v1115_v61 }
 0x240   :  { %v2341_v7 = vpop.f32.mrf.mxu1 }
 0x241   :  { %1437 = vst [vmem:[#allocation2] sm:$0xff] %v1421_v5  ;;  %v1352_v8 = vadd.f32 %v2340_v20, %v2260_v35 }
 0x242   :  { %v2342_v36 = vpop.f32.mrf.mxu1 }
 0x243   :  { %v2343_v48 = vadd.f32 %v2342_v36, %v2341_v7  ;;  %v1422_v0 = vadd.f32 %v1352_v8, %v1116_v4 }
 0x244   :  { %v2344_v42 = vpop.f32.mrf.mxu1 }
 0x245   :  { %v1357_v50 = vadd.f32 %v2343_v48, %v3388_v33  ;;  %1438 = vst [vmem:[#allocation2 + $0x58] sm:$0xff] %v1422_v0 }
 0x246   :  { %v2345_v53 = vpop.f32.mrf.mxu1 }
 0x247   :  { %v1423_v31 = vadd.f32 %v1357_v50, %v1117_v44  ;;  %v2346_v11 = vadd.f32 %v2345_v53, %v2344_v42 }
 0x248   :  { %v2347_v63 = vpop.f32.mrf.mxu1 }
 0x249   :  { %1439 = vst [vmem:[#allocation2 + $0x18] sm:$0xff] %v1423_v31  ;;  %v1362_v17 = vadd.f32 %v2346_v11, %v3390_v59  ;;  %v1121_v59 = vld [vmem:[#allocation2 + $0x48] sm:$0xff] }
 0x24a   :  { %v2348_v47 = vpop.f32.mrf.mxu1 }
 0x24b   :  { %v1424_v16 = vadd.f32 %v1362_v17, %v1118_v57  ;;  %v2349_v24 = vadd.f32 %v2348_v47, %v2347_v63 }
 0x24c   :  { %v2350_v25 = vpop.f32.mrf.mxu1 }
 0x24d   :  { %1440 = vst [vmem:[#allocation2 + $0x50] sm:$0xff] %v1424_v16  ;;  %v1367_v58 = vadd.f32 %v2349_v24, %v3392_v29  ;;  %v1122_v29 = vld [vmem:[#allocation2 + $0x40] sm:$0xff] }
 0x24e   :  { %v2351_v60 = vpop.f32.mrf.mxu1 }
 0x24f   :  { %v1425_v32 = vadd.f32 %v1367_v58, %v1119_v37  ;;  %v2352_v33 = vadd.f32 %v2351_v60, %v2350_v25 }
 0x250   :  { %v2353_v56 = vpop.f32.mrf.mxu1 }
 0x251   :  { %1441 = vst [vmem:[#allocation2 + $0x68] sm:$0xff] %v1425_v32  ;;  %v1372_v9 = vadd.f32 %v2352_v33, %v3394_v43  ;;  %v1123_v43 = vld [vmem:[#allocation2 + $0x20] sm:$0xff] }
 0x252   :  { %v2354_v52 = vpop.f32.mrf.mxu1 }
 0x253   :  { %v1426_v41 = vadd.f32 %v1372_v9, %v1120_v28  ;;  %v2355_v55 = vadd.f32 %v2354_v52, %v2353_v56 }
 0x254   :  { %v2356_v46 = vpop.f32.mrf.mxu1 }
 0x255   :  { %1442 = vst [vmem:[#allocation2 + $0x8] sm:$0xff] %v1426_v41  ;;  %v1377_v10 = vadd.f32 %v2355_v55, %v3396_v18  ;;  %v1124_v18 = vld [vmem:[#allocation2 + $0x10] sm:$0xff] }
 0x256   :  { %v2357_v34 = vpop.f32.mrf.mxu1 }
 0x257   :  { %v1427_v45 = vadd.f32 %v1377_v10, %v1121_v59  ;;  %v2358_v40 = vadd.f32 %v2357_v34, %v2356_v46 }
 0x258   :  { %v2359_v54 = vpop.f32.mrf.mxu1 }
 0x259   :  { %1443 = vst [vmem:[#allocation2 + $0x48] sm:$0xff] %v1427_v45  ;;  %v1382_v13 = vadd.f32 %v2358_v40, %v3398_v38  ;;  %v1125_v38 = vld [vmem:[#allocation2 + $0x38] sm:$0xff] }
 0x25a   :  { %v2360_v49 = vpop.f32.mrf.mxu1 }
 0x25b   :  { %v1428_v26 = vadd.f32 %v1382_v13, %v1122_v29  ;;  %v2361_v30 = vadd.f32 %v2360_v49, %v2359_v54 }
 0x25c   :  { %v2362_v39 = vpop.f32.mrf.mxu1 }
 0x25d   :  { %1444 = vst [vmem:[#allocation2 + $0x40] sm:$0xff] %v1428_v26  ;;  %v1387_v51 = vadd.f32 %v2361_v30, %v3400_v22  ;;  %v1126_v22 = vld [vmem:[#allocation2 + $0x60] sm:$0xff] }
 0x25e   :  { %v2363_v1 = vpop.f32.mrf.mxu1 }
 0x25f   :  { %v1429_v6 = vadd.f32 %v1387_v51, %v1123_v43  ;;  %v2364_v3 = vadd.f32 %v2363_v1, %v2362_v39 }
 0x260   :  { %v2365_v21 = vpop.f32.mrf.mxu1 }
 0x261   :  { %1445 = vst [vmem:[#allocation2 + $0x20] sm:$0xff] %v1429_v6  ;;  %v1392_v61 = vadd.f32 %v2364_v3, %v3402_v14  ;;  %v1127_v14 = vld [vmem:[#allocation2 + $0x70] sm:$0xff] }
 0x262   :  { %v2366_v27 = vpop.f32.mrf.mxu1 }
 0x263   :  { %v1430_v35 = vadd.f32 %v1392_v61, %v1124_v18  ;;  %v2367_v2 = vadd.f32 %v2366_v27, %v2365_v21 }
 0x264   :  { %v2368_v20 = vpop.f32.mrf.mxu1 }
 0x265   :  { %1446 = vst [vmem:[#allocation2 + $0x10] sm:$0xff] %v1430_v35  ;;  %v1397_v5 = vadd.f32 %v2367_v2, %v3404_v19  ;;  %v1128_v19 = vld [vmem:[#allocation2 + $0x78] sm:$0xff] }
 0x266   :  { %v2369_v7 = vpop.f32.mrf.mxu1 }
 0x267   :  { %v1431_v4 = vadd.f32 %v1397_v5, %v1125_v38  ;;  %v2370_v8 = vadd.f32 %v2369_v7, %v2368_v20 }
 0x268   :  { %v2371_v36 = vpop.f32.mrf.mxu1 }
 0x269   :  { %1447 = vst [vmem:[#allocation2 + $0x38] sm:$0xff] %v1431_v4  ;;  %v1402_v48 = vadd.f32 %v2370_v8, %v3406_v15  ;;  %v1129_v15 = vld [vmem:[#allocation2 + $0x28] sm:$0xff] }
 0x26a   :  { %v2372_v0 = vpop.f32.mrf.mxu1 }
 0x26b   :  { %v1432_v44 = vadd.f32 %v1402_v48, %v1126_v22  ;;  %v2373_v42 = vadd.f32 %v2372_v0, %v2371_v36 }
 0x26c   :  { %v2374_v50 = vpop.f32.mrf.mxu1 }
 0x26d   :  { %1448 = vst [vmem:[#allocation2 + $0x60] sm:$0xff] %v1432_v44  ;;  %v1407_v53 = vadd.f32 %v2373_v42, %v3408_v62 }
 0x26e   :  { %v2375_v31 = vpop.f32.mrf.mxu1 }
 0x26f   :  { %v1433_v11 = vadd.f32 %v1407_v53, %v1127_v14  ;;  %v2376_v57 = vadd.f32 %v2375_v31, %v2374_v50 }
 0x270   :  { %v2377_v63 = vpop.f32.mrf.mxu1 }
 0x271   :  { %1449 = vst [vmem:[#allocation2 + $0x70] sm:$0xff] %v1433_v11  ;;  %v1412_v17 = vadd.f32 %v2376_v57, %v3410_v12 }
 0x272   :  { %v2378_v47 = vpop.f32.mrf.mxu1 }
 0x273   :  { %v1434_v16 = vadd.f32 %v1412_v17, %v1128_v19  ;;  %v2379_v24 = vadd.f32 %v2378_v47, %v2377_v63 }
 0x275   :  { %1450 = vst [vmem:[#allocation2 + $0x78] sm:$0xff] %v1434_v16  ;;  %v1417_v37 = vadd.f32 %v2379_v24, %v3412_v23 }
 0x277   :  { %v1435_v25 = vadd.f32 %v1417_v37, %v1129_v15 }
 0x279   :  { %1451 = vst [vmem:[#allocation2 + $0x28] sm:$0xff] %v1435_v25 }
 0x27a PF:  { %v1504_v62 = vld [vmem:[%s3577_s8 + $0x78] sm:$0xff]  ;;  %v1503_v58 = vld [vmem:[%s3577_s8 + $0x70] sm:$0xff]  ;;  %v1502_v12 = vld [vmem:[%s3577_s8 + $0x68] sm:$0xff]  ;;  %vm1699_vm13 = vcmask 1040384   ;;  %vm1650_vm14 = vcmask 72704  }
 0x27b   :  { %2530 = vmatprep.subr.mxu0 %v1504_v62  ;;  %v1501_v23 = vld [vmem:[%s3577_s8 + $0x60] sm:$0xff]  ;;  %v1472_v60 = vld [vmem:[%s3576_s7 + $0x8] sm:$0x1]  ;;  %v1500_v33 = vld [vmem:[%s3577_s8 + $0x58] sm:$0xff] }
 0x27c   :  { %2531 = vmatpush3.msra.mxu0 %v1504_v62  ;;  %2586 = vmatprep.subr.msk.mxu1 %vm1699_vm13, %v1472_v60  ;;  %v1471_v32 = vld [vmem:[%s3576_s7] sm:$0xff]  ;;  %v1456_v56 = vld [vmem:[%s3573_s4 + $0x8] sm:$0xff]  ;;  %v1499_v9 = vld [vmem:[%s3577_s8 + $0x50] sm:$0xff] }
 0x27d   :  { %2532 = vmatprep.subr.mxu0 %v1503_v58  ;;  %2587 = vmatpush3.msk.msra.mxu1 %vm1699_vm13, %v1472_v60  ;;  %v1455_v28 = vld [vmem:[%s3573_s4] sm:$0xff]  ;;  %v1473_v52 = vld [vmem:[#allocation2 + $0x30] sm:$0xff]  ;;  %v1498_v55 = vld [vmem:[%s3577_s8 + $0x48] sm:$0xff] }
 0x27e   :  { %2533 = vmatpush3.msra.mxu0 %v1503_v58  ;;  %2588 = vmatprep.subr.mxu1 %v1471_v32  ;;  %v1457_v41 = vld [vmem:[%s3573_s4 + $0x10] sm:$0xff]  ;;  %v1458_v59 = vld [vmem:[%s3573_s4 + $0x18] sm:$0xff]  ;;  %v1497_v46 = vld [vmem:[%s3577_s8 + $0x40] sm:$0xff] }
 0x27f   :  { %2534 = vmatprep.subr.mxu0 %v1502_v12  ;;  %2589 = vmatpush3.msra.mxu1 %v1471_v32  ;;  %v1459_v10 = vld [vmem:[%s3573_s4 + $0x20] sm:$0xff]  ;;  %v1496_v34 = vld [vmem:[%s3577_s8 + $0x38] sm:$0xff]  ;;  %v1460_v45 = vld [vmem:[%s3573_s4 + $0x28] sm:$0xff] }
 0x280   :  { %2535 = vmatpush3.msra.mxu0 %v1502_v12  ;;  %2590 = vmatprep.mubr.msk.f32.mxu1 %vm1650_vm14, %v1455_v28  ;;  %v1495_v40 = vld [vmem:[%s3577_s8 + $0x30] sm:$0xff]  ;;  %v1494_v54 = vld [vmem:[%s3577_s8 + $0x28] sm:$0xff]  ;;  %v1462_v13 = vld [vmem:[%s3573_s4 + $0x38] sm:$0xff] }
 0x281   :  { %2536 = vmatprep.subr.mxu0 %v1501_v23  ;;  %2591 = vmatmul.mubr.msk.f32.vlgmr.msra.gmra.mxu1 %vm1650_vm14, %v1456_v56  ;;  %v1461_v29 = vld [vmem:[%s3573_s4 + $0x30] sm:$0xff]  ;;  %v1493_v49 = vld [vmem:[%s3577_s8 + $0x20] sm:$0xff]  ;;  %v1492_v30 = vld [vmem:[%s3577_s8 + $0x18] sm:$0xff] }
 0x282   :  { %2537 = vmatpush3.msra.mxu0 %v1501_v23  ;;  %2562 = vmatprep.mubr.f32.mxu0 %v1473_v52  ;;  %v1463_v26 = vld [vmem:[%s3573_s4 + $0x40] sm:$0xff]  ;;  %v1464_v43 = vld [vmem:[%s3573_s4 + $0x48] sm:$0xff]  ;;  %v1491_v39 = vld [vmem:[%s3577_s8 + $0x10] sm:$0xff] }
 0x283   :  { %2538 = vmatprep.subr.mxu0 %v1500_v33  ;;  %2593 = vmatprep.mubr.msk.f32.mxu1 %vm1650_vm14, %v1457_v41  ;;  %v1465_v51 = vld [vmem:[%s3573_s4 + $0x50] sm:$0xff]  ;;  %v1490_v1 = vld [vmem:[%s3577_s8 + $0x8] sm:$0xff]  ;;  %v1466_v6 = vld [vmem:[%s3573_s4 + $0x58] sm:$0xff] }
 0x284   :  { %2539 = vmatpush3.msra.mxu0 %v1500_v33  ;;  %v1489_v3 = vld [vmem:[%s3577_s8] sm:$0xff]  ;;  %v1475_v61 = vld [vmem:[#allocation2 + $0x58] sm:$0xff]  ;;  %v1468_v27 = vld [vmem:[%s3573_s4 + $0x68] sm:$0xff] }
 0x285   :  { %2540 = vmatprep.subr.mxu0 %v1499_v9  ;;  %2594 = vmatmul.mubr.msk.f32.gmra.mxu1 %vm1650_vm14, %v1458_v59  ;;  %v1467_v18 = vld [vmem:[%s3573_s4 + $0x60] sm:$0xff]  ;;  %v1469_v35 = vld [vmem:[%s3573_s4 + $0x70] sm:$0xff]  ;;  %v1476_v2 = vld [vmem:[#allocation2 + $0x18] sm:$0xff] }
 0x286   :  { %2541 = vmatpush3.msra.mxu0 %v1499_v9  ;;  %2596 = vmatprep.mubr.msk.f32.mxu1 %vm1650_vm14, %v1459_v10  ;;  %v1474_v21 = vld [vmem:[#allocation2] sm:$0xff]  ;;  %v1477_v38 = vld [vmem:[#allocation2 + $0x50] sm:$0xff]  ;;  %v1470_v20 = vld [vmem:[%s3573_s4 + $0x78] sm:$0xff] }
 0x287   :  { %2542 = vmatprep.subr.mxu0 %v1498_v55  ;;  %v1478_v5 = vld [vmem:[#allocation2 + $0x68] sm:$0xff]  ;;  %v1481_v8 = vld [vmem:[#allocation2 + $0x40] sm:$0xff]  ;;  %v1483_v36 = vld [vmem:[#allocation2 + $0x10] sm:$0xff] }
 0x288   :  { %2543 = vmatpush3.msra.mxu0 %v1498_v55  ;;  %v1479_v7 = vld [vmem:[#allocation2 + $0x8] sm:$0xff]  ;;  %v1482_v22 = vld [vmem:[#allocation2 + $0x20] sm:$0xff]  ;;  %v1484_v48 = vld [vmem:[#allocation2 + $0x38] sm:$0xff] }
 0x289   :  { %2544 = vmatprep.subr.mxu0 %v1497_v46  ;;  %2597 = vmatmul.mubr.msk.f32.gmra.mxu1 %vm1650_vm14, %v1460_v45  ;;  %v1480_v4 = vld [vmem:[#allocation2 + $0x48] sm:$0xff]  ;;  %v1485_v0 = vld [vmem:[#allocation2 + $0x60] sm:$0xff]  ;;  %v1486_v44 = vld [vmem:[#allocation2 + $0x70] sm:$0xff] }
 0x28a   :  { %2545 = vmatpush3.msra.mxu0 %v1497_v46  ;;  %2599 = vmatprep.mubr.msk.f32.mxu1 %vm1650_vm14, %v1461_v29  ;;  %v1487_v42 = vld [vmem:[#allocation2 + $0x78] sm:$0xff]  ;;  %v1488_v14 = vld [vmem:[#allocation2 + $0x28] sm:$0xff]  ;;  %v3548_v16 = vld [vmem:[%s3578_s9] ss:$0 sm:$0xff]  ;;  %s2675_s9 = smov [#allocation6]  }
 0x28b   :  { %2546 = vmatprep.subr.mxu0 %v1496_v34  ;;  %s1908_s27 = sshll.u32 %s2675_s9, 4  ;;  %s1909_s27 = int_to_ptr.vmem [resolvable:$true] %s1908_s27 }
 0x28c   :  { %2547 = vmatpush3.msra.mxu0 %v1496_v34  ;;  %s2651_s28 = scalar_lea.vmem %s1909_s27, 2048  ;;  %p2656_p5 = scmp.lt.s32.totalorder %s1909_s27, %s1909_s27 }
 0x28d   :  { %2548 = vmatprep.subr.mxu0 %v1495_v40  ;;  %2600 = vmatmul.mubr.msk.f32.gmra.mxu1 %vm1650_vm14, %v1462_v13  ;;  %p2652_p4 = scmp.ne.s32.totalorder %s1909_s27, %s2651_s28  ;;  %p2657_p6 = scmp.lt.s32.totalorder %s2651_s28, %s2651_s28 }
 0x28e   :  { %2549 = vmatpush3.msra.mxu0 %v1495_v40  ;;  %2602 = vmatprep.mubr.msk.f32.mxu1 %vm1650_vm14, %v1463_v26 }
 0x28f   :  { %2550 = vmatprep.subr.mxu0 %v1494_v54  ;;  %p2658_p7 = por %p2657_p6, %p2656_p5 }
 0x290   :  { %2551 = vmatpush3.msra.mxu0 %v1494_v54 }
 0x291   :  { %2552 = vmatprep.subr.mxu0 %v1493_v49  ;;  %2603 = vmatmul.mubr.msk.f32.gmra.mxu1 %vm1650_vm14, %v1464_v43  ;;  %p2659_p8 = pnand %p2658_p7, %p2652_p4 }
 0x292   :  { %2553 = vmatpush3.msra.mxu0 %v1493_v49  ;;  %2605 = vmatprep.mubr.msk.f32.mxu1 %vm1650_vm14, %v1465_v51 }
 0x293   :  { %2554 = vmatprep.subr.mxu0 %v1492_v30 }
 0x294   :  { %2555 = vmatpush3.msra.mxu0 %v1492_v30 }
 0x295   :  { %2556 = vmatprep.subr.mxu0 %v1491_v39  ;;  %2606 = vmatmul.mubr.msk.f32.gmra.mxu1 %vm1650_vm14, %v1466_v6 }
 0x296   :  { %2557 = vmatpush3.msra.mxu0 %v1491_v39  ;;  %2608 = vmatprep.mubr.msk.f32.mxu1 %vm1650_vm14, %v1467_v18 }
 0x297   :  { %2558 = vmatprep.subr.mxu0 %v1490_v1 }
 0x298   :  { %2559 = vmatpush3.msra.mxu0 %v1490_v1 }
 0x299   :  { %2560 = vmatprep.subr.mxu0 %v1489_v3  ;;  %2609 = vmatmul.mubr.msk.f32.gmra.mxu1 %vm1650_vm14, %v1468_v27 }
 0x29a   :  { %2561 = vmatpush3.msra.mxu0 %v1489_v3  ;;  %2611 = vmatprep.mubr.msk.f32.mxu1 %vm1650_vm14, %v1469_v35 }
 0x29b   :  { %2563 = vmatmul.mubr.f32.vlgmr.msra.gmra.mxu0 %v1474_v21 }
 0x29c   :  { %2565 = vmatprep.mubr.f32.mxu0 %v1475_v61 }
 0x29d   :  { %2612 = vmatmul.mubr.msk.f32.gmra.mxu1 %vm1650_vm14, %v1470_v20 }
 0x29f   :  { %2566 = vmatmul.mubr.f32.gmra.mxu0 %v1476_v2 }
 0x2a0   :  { %2568 = vmatprep.mubr.f32.mxu0 %v1477_v38 }
 0x2a3   :  { %2569 = vmatmul.mubr.f32.gmra.mxu0 %v1478_v5 }
 0x2a4   :  { %2571 = vmatprep.mubr.f32.mxu0 %v1479_v7 }
 0x2a7   :  { %2572 = vmatmul.mubr.f32.gmra.mxu0 %v1480_v4 }
 0x2a8   :  { %2574 = vmatprep.mubr.f32.mxu0 %v1481_v8 }
 0x2ab   :  { %2575 = vmatmul.mubr.f32.gmra.mxu0 %v1482_v22 }
 0x2ac   :  { %2577 = vmatprep.mubr.f32.mxu0 %v1483_v36 }
 0x2af   :  { %2578 = vmatmul.mubr.f32.gmra.mxu0 %v1484_v48 }
 0x2b0   :  { %2580 = vmatprep.mubr.f32.mxu0 %v1485_v0 }
 0x2b3   :  { %2581 = vmatmul.mubr.f32.gmra.mxu0 %v1486_v44 }
 0x2b4   :  { %2583 = vmatprep.mubr.f32.mxu0 %v1487_v42 }
 0x2b7   :  { %2584 = vmatmul.mubr.f32.gmra.mxu0 %v1488_v14 }
 0x341   :  { %v2592_v50 = vpop.f32.mrf.mxu1 }
 0x343   :  { %v1769_v53 = vpop.f32.mrf.mxu1 }
 0x345   :  { %v2595_v31 = vpop.f32.mrf.mxu1 }
 0x347   :  { %v1779_v11 = vpop.f32.mrf.mxu1 }
 0x349   :  { %v2598_v57 = vpop.f32.mrf.mxu1 }
 0x34b   :  { %v1789_v19 = vpop.f32.mrf.mxu1 }
 0x34d   :  { %v2601_v63 = vpop.f32.mrf.mxu1 }
 0x34f   :  { %v1799_v17 = vpop.f32.mrf.mxu1 }
 0x351   :  { %v2604_v37 = vpop.f32.mrf.mxu1 }
 0x353   :  { %v1809_v33 = vpop.f32.mrf.mxu1 }
 0x355   :  { %v2607_v10 = vpop.f32.mrf.mxu1 }
 0x357   :  { %v1819_v30 = vpop.f32.mrf.mxu1 }
 0x359   :  { %v2610_v61 = vpop.f32.mrf.mxu1 }
 0x35b   :  { %v2564_v47 = vpop.f32.mrf.mxu0  ;;  %v1829_v8 = vpop.f32.mrf.mxu1 }
 0x35c   :  { %v1775_v24 = vadd.f32 %v2592_v50, %v2564_v47 }
 0x35d   :  { %v1571_v15 = vpop.f32.mrf.mxu0 }
 0x35e   :  { %v1856_v25 = vadd.f32 %v3548_v16, %v1775_v24  ;;  %v1770_v62 = vadd.f32 %v1769_v53, %v1571_v15  ;;  %v2613_v53 = vpop.f32.mrf.mxu1 }
 0x35f   :  { %v2567_v58 = vpop.f32.mrf.mxu0 }
 0x360   :  { %v1872_v12 = vmax.f32 %v1856_v25, 0.0  ;;  %v1855_v23 = vadd.f32 %v3548_v16, %v1770_v62  ;;  %v1785_v60 = vadd.f32 %v2595_v31, %v2567_v58  ;;  %v1839_v24 = vpop.f32.mrf.mxu1 }
 0x361   :  { %v1581_v32 = vpop.f32.mrf.mxu0 }
 0x362   :  { %1888 = vst [vmem:[#allocation6 + $0x8] sm:$0xff] %v1872_v12  ;;  %v1871_v28 = vmax.f32 %v1855_v23, 0.0  ;;  %v1858_v56 = vadd.f32 %v3548_v16, %v1785_v60  ;;  %v1780_v9 = vadd.f32 %v1779_v11, %v1581_v32 }
 0x363   :  { %v2570_v52 = vpop.f32.mrf.mxu0 }
 0x364   :  { %1887 = vst [vmem:[#allocation6] sm:$0xff] %v1871_v28  ;;  %v1874_v41 = vmax.f32 %v1858_v56, 0.0  ;;  %v1857_v55 = vadd.f32 %v3548_v16, %v1780_v9  ;;  %v1795_v59 = vadd.f32 %v2598_v57, %v2570_v52 }
 0x365   :  { %v1591_v46 = vpop.f32.mrf.mxu0 }
 0x366   :  { %1890 = vst [vmem:[#allocation6 + $0x18] sm:$0xff] %v1874_v41  ;;  %v1873_v34 = vmax.f32 %v1857_v55, 0.0  ;;  %v1860_v45 = vadd.f32 %v3548_v16, %v1795_v59  ;;  %v1790_v40 = vadd.f32 %v1789_v19, %v1591_v46 }
 0x367   :  { %v2573_v29 = vpop.f32.mrf.mxu0 }
 0x368   :  { %1889 = vst [vmem:[#allocation6 + $0x10] sm:$0xff] %v1873_v34  ;;  %v1876_v54 = vmax.f32 %v1860_v45, 0.0  ;;  %v1859_v13 = vadd.f32 %v3548_v16, %v1790_v40  ;;  %v1805_v49 = vadd.f32 %v2601_v63, %v2573_v29 }
 0x369   :  { %v1601_v26 = vpop.f32.mrf.mxu0 }
 0x36a   :  { %1892 = vst [vmem:[#allocation6 + $0x28] sm:$0xff] %v1876_v54  ;;  %v1875_v43 = vmax.f32 %v1859_v13, 0.0  ;;  %v1862_v39 = vadd.f32 %v3548_v16, %v1805_v49  ;;  %v1800_v51 = vadd.f32 %v1799_v17, %v1601_v26 }
 0x36b   :  { %v2576_v1 = vpop.f32.mrf.mxu0 }
 0x36c   :  { %1891 = vst [vmem:[#allocation6 + $0x20] sm:$0xff] %v1875_v43  ;;  %v1878_v6 = vmax.f32 %v1862_v39, 0.0  ;;  %v1861_v3 = vadd.f32 %v3548_v16, %v1800_v51  ;;  %v1815_v18 = vadd.f32 %v2604_v37, %v2576_v1 }
 0x36d   :  { %v1611_v21 = vpop.f32.mrf.mxu0 }
 0x36e   :  { %1894 = vst [vmem:[#allocation6 + $0x38] sm:$0xff] %v1878_v6  ;;  %v1877_v27 = vmax.f32 %v1861_v3, 0.0  ;;  %v1864_v35 = vadd.f32 %v3548_v16, %v1815_v18  ;;  %v1810_v2 = vadd.f32 %v1809_v33, %v1611_v21 }
 0x36f   :  { %v2579_v38 = vpop.f32.mrf.mxu0 }
 0x370   :  { %1893 = vst [vmem:[#allocation6 + $0x30] sm:$0xff] %v1877_v27  ;;  %v1880_v20 = vmax.f32 %v1864_v35, 0.0  ;;  %v1863_v5 = vadd.f32 %v3548_v16, %v1810_v2  ;;  %v1825_v7 = vadd.f32 %v2607_v10, %v2579_v38 }
 0x371   :  { %v1621_v4 = vpop.f32.mrf.mxu0 }
 0x372   :  { %1896 = vst [vmem:[#allocation6 + $0x48] sm:$0xff] %v1880_v20  ;;  %v1879_v22 = vmax.f32 %v1863_v5, 0.0  ;;  %v1866_v36 = vadd.f32 %v3548_v16, %v1825_v7  ;;  %v1820_v48 = vadd.f32 %v1819_v30, %v1621_v4 }
 0x373   :  { %v2582_v0 = vpop.f32.mrf.mxu0 }
 0x374   :  { %1895 = vst [vmem:[#allocation6 + $0x40] sm:$0xff] %v1879_v22  ;;  %v1882_v44 = vmax.f32 %v1866_v36, 0.0  ;;  %v1865_v42 = vadd.f32 %v3548_v16, %v1820_v48  ;;  %v1835_v14 = vadd.f32 %v2610_v61, %v2582_v0 }
 0x375   :  { %v1631_v50 = vpop.f32.mrf.mxu0 }
 0x376   :  { %1898 = vst [vmem:[#allocation6 + $0x58] sm:$0xff] %v1882_v44  ;;  %v1881_v31 = vmax.f32 %v1865_v42, 0.0  ;;  %v1868_v11 = vadd.f32 %v3548_v16, %v1835_v14  ;;  %v1830_v57 = vadd.f32 %v1829_v8, %v1631_v50 }
 0x377   :  { %v2585_v19 = vpop.f32.mrf.mxu0 }
 0x378   :  { %1897 = vst [vmem:[#allocation6 + $0x50] sm:$0xff] %v1881_v31  ;;  %v1884_v63 = vmax.f32 %v1868_v11, 0.0  ;;  %v1867_v17 = vadd.f32 %v3548_v16, %v1830_v57  ;;  %v1845_v47 = vadd.f32 %v2613_v53, %v2585_v19 }
 0x379   :  { %v1641_v15 = vpop.f32.mrf.mxu0 }
 0x37a   :  { %1900 = vst [vmem:[#allocation6 + $0x68] sm:$0xff] %v1884_v63  ;;  %v1883_v37 = vmax.f32 %v1867_v17, 0.0  ;;  %v1870_v25 = vadd.f32 %v3548_v16, %v1845_v47  ;;  %v1840_v62 = vadd.f32 %v1839_v24, %v1641_v15 }
 0x37c   :  { %1899 = vst [vmem:[#allocation6 + $0x60] sm:$0xff] %v1883_v37  ;;  %v1886_v58 = vmax.f32 %v1870_v25, 0.0  ;;  %v1869_v12 = vadd.f32 %v3548_v16, %v1840_v62 }
 0x37e   :  { %1902 = vst [vmem:[#allocation6 + $0x78] sm:$0xff] %v1886_v58  ;;  %v1885_v23 = vmax.f32 %v1869_v12, 0.0 }
 0x380   :  { %1901 = vst [vmem:[#allocation6 + $0x70] sm:$0xff] %v1885_v23 }
 0x381   :  { %2662 = shalt.err (!%p2659_p8)
}
 0x382   :  { %s2676_s29 = smov 128   ;;  %s2677_s0 = smov 8  }
 0x383   :  { %1914 = dma.vmem_to_hbm [thread:$0]  %s1909_s27, 2048, %s3579_s10, [#allocation7], %s2676_s29, %s2676_s29, %s2677_s0  }
 0x384   :  { %2671 = dma.done.wait [#allocation7], 2048  }
 0x385   :  { %2672 = vsyncadd [#allocation7], 4294965248 }
 0x386   :  { %1918 = vsyncpa [#allocation7], 1 }

</bundles_post_ra>
